<compile_context>
chip_gen: v7x
topology: tpu7x:2x2x1
jax: 0.10.0
libtpu: 0.0.40
codegen_flags: <defaults>
</compile_context>

<pallas_src>
import numpy as np
import jax
import jax.numpy as jnp
from jax import lax
from jax.experimental import pallas as pl
from jax.experimental.pallas import tpu as pltpu

LANE = 128          # lane width / padded feature width per position chunk
EMB_PAD = 128       # padded emb_dim for mlp1 / t / mlp2


def _round_up(x, m):
    return (x + m - 1) // m * m


# ---------------------------------------------------------------------------
# Kernel: fused conv matmul + ReLU + segmented max-pool + mlp1/hardtanh +
# fused (t | mlp2) matmul + highway-style gate.
# ---------------------------------------------------------------------------
def mimick_kernel(x_ref, wconv_ref, wm1_ref, wtm2_ref, b_ref, out_ref):
    n_chunks = wconv_ref.shape[1] // LANE          # static: max conv positions

    x = x_ref[...]                                  # (Bt, K_pad) bf16
    # All 6 convolutions as one MXU matmul (K=512, N=n_chunks*128), f32 acc.
    y = jnp.dot(x, wconv_ref[...], preferred_element_type=jnp.float32)
    y = jnp.maximum(y, 0.0)                         # ReLU (padded cols stay 0)

    # Segmented max-pool over window positions: balanced tree of maxima over
    # 128-lane-aligned chunks (short dep chain, no reshapes).
    chunks = [y[:, p * LANE:(p + 1) * LANE] for p in range(n_chunks)]
    while len(chunks) > 1:
        nxt = [jnp.maximum(a, b) for a, b in zip(chunks[0::2], chunks[1::2])]
        if len(chunks) % 2:
            nxt.append(chunks[-1])
        chunks = nxt
    pooled = chunks[0]
    # pooled lanes 0..95 == torch.cat([x2_max..x7_max]); lanes 96..127 are 0.

    # mlp1: Linear + Hardtanh(-3, 3)
    h = jnp.dot(pooled.astype(jnp.bfloat16), wm1_ref[...],
                preferred_element_type=jnp.float32) + b_ref[:, 0:EMB_PAD]
    h = jnp.clip(h, -3.0, 3.0)                      # (Bt, 128) f32

    # t and mlp2 fused into one matmul: cols [0:128)=t-pre, [128:256)=mlp2-pre
    tm = jnp.dot(h.astype(jnp.bfloat16), wtm2_ref[...],
                 preferred_element_type=jnp.float32) + b_ref[:, EMB_PAD:3 * EMB_PAD]
    t = jnp.maximum(tm[:, 0:EMB_PAD], 0.0)          # ReLU
    m2 = jnp.clip(tm[:, EMB_PAD:2 * EMB_PAD], -3.0, 3.0)

    # highway-style gate: t*m2 + (1-t)*h  ==  h + t*(m2 - h)  (lane-dense store)
    out_ref[...] = h + t * (m2 - h)


# ---------------------------------------------------------------------------
# One-time weight packing (host-side): banded fused conv weight + padded MLPs.
# ---------------------------------------------------------------------------
def pack_params(params, *, char_max_len, char_emb_dim, num_feature, emb_dim):
    L, D, F = char_max_len, char_emb_dim, num_feature
    n_conv = 6
    n_chunks = L - 2 + 1                               # max positions (conv2)
    k_pad = _round_up(L * D, LANE)                     # contraction dim pad

    # Banded conv weight: rows = flattened (pos, emb) of x, cols = (p, g, f).
    w_conv = np.zeros((k_pad, n_chunks * LANE), np.float32)
    for g in range(n_conv):
        k = g + 2
        wk = np.asarray(params[f"conv{k}"], np.float32)      # (k, D, F)
        flat = wk.reshape(k * D, F)
        for p in range(L - k + 1):                           # valid positions
            w_conv[p * D:(p + k) * D,
                   p * LANE + g * F: p * LANE + (g + 1) * F] = flat

    w_m1 = np.zeros((LANE, EMB_PAD), np.float32)
    w_m1[:n_conv * F, :emb_dim] = np.asarray(params["wm1"], np.float32)

    w_tm2 = np.zeros((EMB_PAD, 2 * EMB_PAD), np.float32)
    w_tm2[:emb_dim, :emb_dim] = np.asarray(params["wt"], np.float32)
    w_tm2[:emb_dim, EMB_PAD:EMB_PAD + emb_dim] = np.asarray(params["wm2"], np.float32)

    b = np.zeros((1, 3 * EMB_PAD), np.float32)
    b[0, :emb_dim] = np.asarray(params["bm1"], np.float32).reshape(-1)
    b[0, EMB_PAD:EMB_PAD + emb_dim] = np.asarray(params["bt"], np.float32).reshape(-1)
    b[0, 2 * EMB_PAD:2 * EMB_PAD + emb_dim] = np.asarray(params["bm2"], np.float32).reshape(-1)

    return {
        # bf16 table: gather yields bf16 directly (kernel matmuls take bf16).
        "embedding": jnp.asarray(params["embedding"], jnp.bfloat16),
        "w_conv": jnp.asarray(w_conv, jnp.bfloat16),   # (512, 1792) bf16
        "w_m1":   jnp.asarray(w_m1, jnp.bfloat16),     # (128, 128)  bf16
        "w_tm2":  jnp.asarray(w_tm2, jnp.bfloat16),    # (128, 256)  bf16
        "b":      jnp.asarray(b, jnp.float32),         # (1, 384)    f32
    }


def mimick_cnn_forward(inputs, packed, *, char_max_len, char_emb_dim, emb_dim):
    """inputs: (B, 1, L) int32 char ids. Returns (B, emb_dim) float32."""
    L, D = char_max_len, char_emb_dim
    k_pad = packed["w_conv"].shape[0]
    n_cols = packed["w_conv"].shape[1]

    # Embedding gather (plain-JAX glue), bf16 out, flatten to (B, L*D).
    # TODO(synk): in-kernel gather (jnp.take on a VMEM ref) would fuse this,
    # but the flatten+pad to 512 lanes is cleaner done wrapper-side.
    x = jnp.take(packed["embedding"], inputs[:, 0, :], axis=0)   # (B, L, D) bf16
    B = x.shape[0]
    x_flat = x.reshape(B, L * D)

    # Batch tiling: pad B to a sublane multiple; cap tile for v7x 64 MiB VMEM.
    b_tile = min(_round_up(B, 8), 512)
    b_pad = _round_up(B, b_tile)
    x_flat = jnp.pad(x_flat, ((0, b_pad - B), (0, k_pad - L * D)))

    out = pl.pallas_call(
        mimick_kernel,
        out_shape=jax.ShapeDtypeStruct((b_pad, EMB_PAD), jnp.float32),
        grid_spec=pltpu.PrefetchScalarGridSpec(
            num_scalar_prefetch=0,
            grid=(b_pad // b_tile,),
            in_specs=[
                pl.BlockSpec((b_tile, k_pad), lambda i: (i, 0)),
                pl.BlockSpec((k_pad, n_cols), lambda i: (0, 0)),
                pl.BlockSpec((LANE, EMB_PAD), lambda i: (0, 0)),
                pl.BlockSpec((EMB_PAD, 2 * EMB_PAD), lambda i: (0, 0)),
                pl.BlockSpec((1, 3 * EMB_PAD), lambda i: (0, 0)),
            ],
            out_specs=pl.BlockSpec((b_tile, EMB_PAD), lambda i: (i, 0)),
        ),
        compiler_params=pltpu.CompilerParams(
            dimension_semantics=("parallel",),
            vmem_limit_bytes=32 * 1024 * 1024,
        ),
    )(x_flat, packed["w_conv"], packed["w_m1"], packed["w_tm2"], packed["b"])

    return out[:B, :emb_dim]


# ---------------------------------------------------------------------------
# Pure-JAX reference matching the kernel's numerics (bf16 matmul inputs,
# f32 accumulation) for the correctness check.
# ---------------------------------------------------------------------------
def mimick_cnn_ref(inputs, params, *, char_max_len, char_emb_dim, emb_dim):
    def bf(a):
        return a.astype(jnp.bfloat16).astype(jnp.float32)

    x = jnp.take(params["embedding"], inputs[:, 0, :], axis=0).astype(jnp.float32)
    xb = bf(x)
    feats = []
    for k in range(2, 8):
        w = bf(params[f"conv{k}"])                       # (k, D, F)
        Lk = char_max_len - k + 1
        acc = jnp.zeros((x.shape[0], Lk, w.shape[2]), jnp.float32)
        for j in range(k):
            acc = acc + jnp.einsum("bpd,df->bpf", xb[:, j:j + Lk, :], w[j],
                                   precision=lax.Precision.HIGHEST)
        feats.append(jnp.max(jnp.maximum(acc, 0.0), axis=1))
    cat = jnp.concatenate(feats, axis=-1)                # (B, 96)

    h = jnp.dot(bf(cat), bf(params["wm1"]),
                precision=lax.Precision.HIGHEST) + params["bm1"]
    h = jnp.clip(h, -3.0, 3.0)
    t = jnp.maximum(jnp.dot(bf(h), bf(params["wt"]),
                            precision=lax.Precision.HIGHEST) + params["bt"], 0.0)
    m2 = jnp.clip(jnp.dot(bf(h), bf(params["wm2"]),
                          precision=lax.Precision.HIGHEST) + params["bm2"], -3.0, 3.0)
    return t * m2 + (1.0 - t) * h


def init_params(key, vocab, char_emb_dim, num_feature, emb_dim):
    ks = jax.random.split(key, 16)
    p = {}
    p["embedding"] = jax.random.normal(ks[0], (vocab, char_emb_dim), jnp.float32)
    for i, k in enumerate(range(2, 8)):
        bound = 1.0 / float(np.sqrt(k * char_emb_dim))
        # PyTorch conv weight is (F, 1, k, D); stored here as (k, D, F).
        p[f"conv{k}"] = jax.random.uniform(
            ks[1 + i], (k, char_emb_dim, num_feature), jnp.float32, -bound, bound)

    def linear(kw, kb, fan_in, fan_out):
        bound = 1.0 / float(np.sqrt(fan_in))
        w = jax.random.uniform(kw, (fan_in, fan_out), jnp.float32, -bound, bound)
        b = jax.random.uniform(kb, (1, fan_out), jnp.float32, -bound, bound)
        return w, b

    p["wm1"], p["bm1"] = linear(ks[7], ks[8], num_feature * 6, emb_dim)
    p["wm2"], p["bm2"] = linear(ks[9], ks[10], emb_dim, emb_dim)
    p["wt"], p["bt"] = linear(ks[11], ks[12], emb_dim, emb_dim)
    return p


if __name__ == "__main__":
    # Small shapes consistent with the module.
    BATCH = 8
    VOCAB = 40
    CHAR_MAX_LEN = 15
    CHAR_EMB_DIM = 32
    NUM_FEATURE = 16
    EMB_DIM = 32

    key = jax.random.PRNGKey(0)
    k_params, k_inputs = jax.random.split(key)
    params = init_params(k_params, VOCAB, CHAR_EMB_DIM, NUM_FEATURE, EMB_DIM)
    packed = pack_params(params, char_max_len=CHAR_MAX_LEN,
                         char_emb_dim=CHAR_EMB_DIM,
                         num_feature=NUM_FEATURE, emb_dim=EMB_DIM)

    inputs = jax.random.randint(k_inputs, (BATCH, 1, CHAR_MAX_LEN), 0, VOCAB,
                                dtype=jnp.int32)

    out = jax.block_until_ready(
        mimick_cnn_forward(inputs, packed, char_max_len=CHAR_MAX_LEN,
                           char_emb_dim=CHAR_EMB_DIM, emb_dim=EMB_DIM))
    ref = jax.block_until_ready(
        mimick_cnn_ref(inputs, params, char_max_len=CHAR_MAX_LEN,
                       char_emb_dim=CHAR_EMB_DIM, emb_dim=EMB_DIM))

    assert out.shape == (BATCH, EMB_DIM), out.shape
    err = float(jnp.max(jnp.abs(out - ref)))
    # bf16 matmul inputs with f32 accumulation -> tolerance relaxed vs pure f32.
    assert jnp.allclose(out, ref, atol=2e-2, rtol=2e-2), err
    print("KERNEL_OK")
</pallas_src>

<mosaic_0001>
module attributes {stable_mosaic.version = 11 : i64} {
  func.func @mimick_kernel(%arg0: i32, %arg1: memref<8x512xbf16, #tpu.memory_space<vmem>>, %arg2: memref<512x1792xbf16, #tpu.memory_space<vmem>>, %arg3: memref<128x128xbf16, #tpu.memory_space<vmem>>, %arg4: memref<128x256xbf16, #tpu.memory_space<vmem>>, %arg5: memref<1x384xf32, #tpu.memory_space<vmem>>, %arg6: memref<8x128xf32, #tpu.memory_space<vmem>>) attributes {dimension_semantics = [#tpu.dimension_semantics<parallel>], iteration_bounds = array<i64: 1>, scalar_prefetch = 0 : i64, scratch_operands = 0 : i64, tpu.core_type = #tpu.core_type<tc>, window_params = [{transform_indices = @transform_0, window_bounds = array<i64: 8, 512>}, {pipeline_mode = #tpu.pipeline_mode<synchronous>, transform_indices = @transform_1, window_bounds = array<i64: 512, 1792>}, {pipeline_mode = #tpu.pipeline_mode<synchronous>, transform_indices = @transform_2, window_bounds = array<i64: 128, 128>}, {pipeline_mode = #tpu.pipeline_mode<synchronous>, transform_indices = @transform_3, window_bounds = array<i64: 128, 256>}, {pipeline_mode = #tpu.pipeline_mode<synchronous>, transform_indices = @transform_4, window_bounds = array<i64: 1, 384>}, {transform_indices = @transform_5, window_bounds = array<i64: 8, 128>}]} {
    %c0 = arith.constant 0 : index
    %c0_0 = arith.constant 0 : index
    %0 = vector.load %arg1[%c0, %c0_0] : memref<8x512xbf16, #tpu.memory_space<vmem>>, vector<8x512xbf16>
    %c0_1 = arith.constant 0 : index
    %c0_2 = arith.constant 0 : index
    %1 = vector.load %arg2[%c0_1, %c0_2] : memref<512x1792xbf16, #tpu.memory_space<vmem>>, vector<512x1792xbf16>
    %cst = arith.constant dense<0.000000e+00> : vector<8x1792xf32>
    %2 = tpu.matmul %0, %1, %cst {dimension_numbers = #tpu.dot_dimension_numbers<[1], [0], [0], [1], [0, 0, 1, 1], [], []>} : vector<8x512xbf16>, vector<512x1792xbf16>, vector<8x1792xf32> -> vector<8x1792xf32>
    %cst_3 = arith.constant 0.000000e+00 : f32
    %3 = vector.broadcast %cst_3 : f32 to vector<8x1792xf32>
    %4 = arith.maximumf %2, %3 : vector<8x1792xf32>
    %5 = vector.extract_strided_slice %4 {offsets = [0, 0], sizes = [8, 128], strides = [1, 1]} : vector<8x1792xf32> to vector<8x128xf32>
    %6 = vector.extract_strided_slice %4 {offsets = [0, 128], sizes = [8, 128], strides = [1, 1]} : vector<8x1792xf32> to vector<8x128xf32>
    %7 = vector.extract_strided_slice %4 {offsets = [0, 256], sizes = [8, 128], strides = [1, 1]} : vector<8x1792xf32> to vector<8x128xf32>
    %8 = vector.extract_strided_slice %4 {offsets = [0, 384], sizes = [8, 128], strides = [1, 1]} : vector<8x1792xf32> to vector<8x128xf32>
    %9 = vector.extract_strided_slice %4 {offsets = [0, 512], sizes = [8, 128], strides = [1, 1]} : vector<8x1792xf32> to vector<8x128xf32>
    %10 = vector.extract_strided_slice %4 {offsets = [0, 640], sizes = [8, 128], strides = [1, 1]} : vector<8x1792xf32> to vector<8x128xf32>
    %11 = vector.extract_strided_slice %4 {offsets = [0, 768], sizes = [8, 128], strides = [1, 1]} : vector<8x1792xf32> to vector<8x128xf32>
    %12 = vector.extract_strided_slice %4 {offsets = [0, 896], sizes = [8, 128], strides = [1, 1]} : vector<8x1792xf32> to vector<8x128xf32>
    %13 = vector.extract_strided_slice %4 {offsets = [0, 1024], sizes = [8, 128], strides = [1, 1]} : vector<8x1792xf32> to vector<8x128xf32>
    %14 = vector.extract_strided_slice %4 {offsets = [0, 1152], sizes = [8, 128], strides = [1, 1]} : vector<8x1792xf32> to vector<8x128xf32>
    %15 = vector.extract_strided_slice %4 {offsets = [0, 1280], sizes = [8, 128], strides = [1, 1]} : vector<8x1792xf32> to vector<8x128xf32>
    %16 = vector.extract_strided_slice %4 {offsets = [0, 1408], sizes = [8, 128], strides = [1, 1]} : vector<8x1792xf32> to vector<8x128xf32>
    %17 = vector.extract_strided_slice %4 {offsets = [0, 1536], sizes = [8, 128], strides = [1, 1]} : vector<8x1792xf32> to vector<8x128xf32>
    %18 = vector.extract_strided_slice %4 {offsets = [0, 1664], sizes = [8, 128], strides = [1, 1]} : vector<8x1792xf32> to vector<8x128xf32>
    %19 = arith.maximumf %5, %6 : vector<8x128xf32>
    %20 = arith.maximumf %7, %8 : vector<8x128xf32>
    %21 = arith.maximumf %9, %10 : vector<8x128xf32>
    %22 = arith.maximumf %11, %12 : vector<8x128xf32>
    %23 = arith.maximumf %13, %14 : vector<8x128xf32>
    %24 = arith.maximumf %15, %16 : vector<8x128xf32>
    %25 = arith.maximumf %17, %18 : vector<8x128xf32>
    %26 = arith.maximumf %19, %20 : vector<8x128xf32>
    %27 = arith.maximumf %21, %22 : vector<8x128xf32>
    %28 = arith.maximumf %23, %24 : vector<8x128xf32>
    %29 = arith.maximumf %26, %27 : vector<8x128xf32>
    %30 = arith.maximumf %28, %25 : vector<8x128xf32>
    %31 = arith.maximumf %29, %30 : vector<8x128xf32>
    %32 = arith.truncf %31 : vector<8x128xf32> to vector<8x128xbf16>
    %c0_4 = arith.constant 0 : index
    %c0_5 = arith.constant 0 : index
    %33 = vector.load %arg3[%c0_4, %c0_5] : memref<128x128xbf16, #tpu.memory_space<vmem>>, vector<128x128xbf16>
    %cst_6 = arith.constant dense<0.000000e+00> : vector<8x128xf32>
    %34 = tpu.matmul %32, %33, %cst_6 {dimension_numbers = #tpu.dot_dimension_numbers<[1], [0], [0], [1], [0, 0, 1, 1], [], []>} : vector<8x128xbf16>, vector<128x128xbf16>, vector<8x128xf32> -> vector<8x128xf32>
    %c0_7 = arith.constant 0 : index
    %c0_8 = arith.constant 0 : index
    %35 = vector.load %arg5[%c0_7, %c0_8] : memref<1x384xf32, #tpu.memory_space<vmem>>, vector<1x128xf32>
    %36 = vector.broadcast %35 : vector<1x128xf32> to vector<8x128xf32>
    %37 = arith.addf %34, %36 : vector<8x128xf32>
    %cst_9 = arith.constant -3.000000e+00 : f32
    %cst_10 = arith.constant 3.000000e+00 : f32
    %38 = vector.broadcast %cst_9 : f32 to vector<8x128xf32>
    %39 = arith.maximumf %38, %37 : vector<8x128xf32>
    %40 = vector.broadcast %cst_10 : f32 to vector<8x128xf32>
    %41 = arith.minimumf %40, %39 : vector<8x128xf32>
    %42 = arith.truncf %41 : vector<8x128xf32> to vector<8x128xbf16>
    %c0_11 = arith.constant 0 : index
    %c0_12 = arith.constant 0 : index
    %43 = vector.load %arg4[%c0_11, %c0_12] : memref<128x256xbf16, #tpu.memory_space<vmem>>, vector<128x256xbf16>
    %cst_13 = arith.constant dense<0.000000e+00> : vector<8x256xf32>
    %44 = tpu.matmul %42, %43, %cst_13 {dimension_numbers = #tpu.dot_dimension_numbers<[1], [0], [0], [1], [0, 0, 1, 1], [], []>} : vector<8x128xbf16>, vector<128x256xbf16>, vector<8x256xf32> -> vector<8x256xf32>
    %c0_14 = arith.constant 0 : index
    %c128 = arith.constant 128 : index
    %45 = vector.load %arg5[%c0_14, %c128] : memref<1x384xf32, #tpu.memory_space<vmem>>, vector<1x256xf32>
    %46 = vector.broadcast %45 : vector<1x256xf32> to vector<8x256xf32>
    %47 = arith.addf %44, %46 : vector<8x256xf32>
    %48 = vector.extract_strided_slice %47 {offsets = [0, 0], sizes = [8, 128], strides = [1, 1]} : vector<8x256xf32> to vector<8x128xf32>
    %cst_15 = arith.constant 0.000000e+00 : f32
    %49 = vector.broadcast %cst_15 : f32 to vector<8x128xf32>
    %50 = arith.maximumf %48, %49 : vector<8x128xf32>
    %51 = vector.extract_strided_slice %47 {offsets = [0, 128], sizes = [8, 128], strides = [1, 1]} : vector<8x256xf32> to vector<8x128xf32>
    %cst_16 = arith.constant -3.000000e+00 : f32
    %cst_17 = arith.constant 3.000000e+00 : f32
    %52 = vector.broadcast %cst_16 : f32 to vector<8x128xf32>
    %53 = arith.maximumf %52, %51 : vector<8x128xf32>
    %54 = vector.broadcast %cst_17 : f32 to vector<8x128xf32>
    %55 = arith.minimumf %54, %53 : vector<8x128xf32>
    %56 = arith.subf %55, %41 : vector<8x128xf32>
    %57 = arith.mulf %50, %56 : vector<8x128xf32>
    %58 = arith.addf %41, %57 : vector<8x128xf32>
    %c0_18 = arith.constant 0 : index
    %c0_19 = arith.constant 0 : index
    %59 = vector.load %arg6[%c0_18, %c0_19] : memref<8x128xf32, #tpu.memory_space<vmem>>, vector<8x128xf32>
    tpu.vector_store %arg6[%c0_18, %c0_19], %58 {strides = array<i32>} : memref<8x128xf32, #tpu.memory_space<vmem>>, vector<8x128xf32>,
    return
  }
  func.func @transform_0(%arg0: i32) -> (i32, i32) {
    %c0_i32 = arith.constant 0 : i32
    %c0_i32_0 = arith.constant 0 : i32
    return %arg0, %c0_i32 : i32, i32
  }
  func.func @transform_1(%arg0: i32) -> (i32, i32) {
    %c0_i32 = arith.constant 0 : i32
    %c0_i32_0 = arith.constant 0 : i32
    %c0_i32_1 = arith.constant 0 : i32
    return %c0_i32, %c0_i32_0 : i32, i32
  }
  func.func @transform_2(%arg0: i32) -> (i32, i32) {
    %c0_i32 = arith.constant 0 : i32
    %c0_i32_0 = arith.constant 0 : i32
    %c0_i32_1 = arith.constant 0 : i32
    return %c0_i32, %c0_i32_0 : i32, i32
  }
  func.func @transform_3(%arg0: i32) -> (i32, i32) {
    %c0_i32 = arith.constant 0 : i32
    %c0_i32_0 = arith.constant 0 : i32
    %c0_i32_1 = arith.constant 0 : i32
    return %c0_i32, %c0_i32_0 : i32, i32
  }
  func.func @transform_4(%arg0: i32) -> (i32, i32) {
    %c0_i32 = arith.constant 0 : i32
    %c0_i32_0 = arith.constant 0 : i32
    %c0_i32_1 = arith.constant 0 : i32
    return %c0_i32, %c0_i32_0 : i32, i32
  }
  func.func @transform_5(%arg0: i32) -> (i32, i32) {
    %c0_i32 = arith.constant 0 : i32
    %c0_i32_0 = arith.constant 0 : i32
    return %arg0, %c0_i32 : i32, i32
  }
}

</mosaic_0001>

<bundles_post_ra>
// kernel: tpu_custom_call.1
= control target key start
LH: loop header
LB: loop body
LE: loop exit
PB: predicated region body
PF: predicated region fallthrough
CT: control target
= control target key end

     0   :  { %10 = vsyncpa [#allocation3], 0  ;;  %s5265_s0 = inlined_call_operand.hbm [shape: bf16[8,512], index: 0, kind: input, shape index: {}]   ;;  %s5266_s1 = inlined_call_operand.hbm [shape: bf16[512,1792], index: 1, kind: input, shape index: {}]   ;;  %s5267_s2 = inlined_call_operand.hbm [shape: bf16[128,128], index: 2, kind: input, shape index: {}]   ;;  %s5268_s3 = inlined_call_operand.hbm [shape: bf16[128,256], index: 3, kind: input, shape index: {}]   ;;  %s5269_s4 = inlined_call_operand.hbm [shape: f32[1,384], index: 4, kind: input, shape index: {}]   ;;  %s5270_s5 = inlined_call_operand.hbm [shape: f32[8,128], index: 5, kind: output, shape index: {}]  }
   0x1   :  { %11 = vsyncpa [#allocation6], 0 }
   0x2   :  { %12 = vsyncpa [#allocation9], 0 }
   0x3   :  { %13 = vsyncpa [#allocation4], 0  ;;  %s5078_s18 = smov [#allocation5]   ;;  %s4938_s22 = scalar_lea.hbm %s5266_s1, 57344 }
   0x4   :  { %s29_s19 = sshll.u32 %s5078_s18, 4  ;;  %p4939_p0 = scmp.ne.s32.totalorder %s5266_s1, %s4938_s22  ;;  %s30_s19 = int_to_ptr.vmem [resolvable:$true] %s29_s19 }
   0x5   :  { %p4942_p1 = scmp.lt.u32.totalorder %s4938_s22, %s5266_s1 }
   0x7   :  { %p4944_p2 = pnand %p4942_p1, %p4939_p0 }
   0x9   :  { %4947 = shalt.err (!%p4944_p2)
}
   0xa   :  { %s4948_s27 = scalar_lea.vmem %s30_s19, 57344  ;;  %p4953_p4 = scmp.lt.s32.totalorder %s30_s19, %s30_s19 }
   0xb   :  { %p4949_p3 = scmp.ne.s32.totalorder %s30_s19, %s4948_s27  ;;  %p4954_p5 = scmp.lt.s32.totalorder %s4948_s27, %s4948_s27 }
   0xd   :  { %p4955_p6 = por %p4954_p5, %p4953_p4 }
   0xf   :  { %p4956_p7 = pnand %p4955_p6, %p4949_p3 }
  0x11   :  { %4959 = shalt.err (!%p4956_p7)
}
  0x12   :  { %s5079_s28 = smov 896   ;;  %s5080_s29 = smov 56  }
  0x13   :  { %35 = dma.hbm_to_vmem [thread:$0]  %s5266_s1, 57344, %s30_s19, [#allocation6], %s5079_s28, %s5079_s28, %s5080_s29  }
  0x14   :  { %s5081_s7 = smov [#allocation8]   ;;  %s4960_s11 = scalar_lea.hbm %s5268_s3, 2048 }
  0x15   :  { %s53_s8 = sshll.u32 %s5081_s7, 4  ;;  %p4961_p8 = scmp.ne.s32.totalorder %s5268_s3, %s4960_s11  ;;  %s54_s8 = int_to_ptr.vmem [resolvable:$true] %s53_s8 }
  0x16   :  { %p4964_p9 = scmp.lt.u32.totalorder %s4960_s11, %s5268_s3 }
  0x18   :  { %p4966_p10 = pnand %p4964_p9, %p4961_p8 }
  0x1a   :  { %4969 = shalt.err (!%p4966_p10)
}
  0x1b   :  { %s4970_s16 = scalar_lea.vmem %s54_s8, 2048  ;;  %p4975_p12 = scmp.lt.s32.totalorder %s54_s8, %s54_s8 }
  0x1c   :  { %p4971_p11 = scmp.ne.s32.totalorder %s54_s8, %s4970_s16  ;;  %p4976_p13 = scmp.lt.s32.totalorder %s4970_s16, %s4970_s16 }
  0x1e   :  { %p4977_p0 = por %p4976_p13, %p4975_p12 }
  0x20   :  { %p4978_p1 = pnand %p4977_p0, %p4971_p11 }
  0x22   :  { %4981 = shalt.err (!%p4978_p1)
}
  0x23   :  { %s5082_s1 = smov 128   ;;  %s5083_s17 = smov 8  }
  0x24   :  { %59 = dma.hbm_to_vmem [thread:$0]  %s5268_s3, 2048, %s54_s8, [#allocation9], %s5082_s1, %s5082_s1, %s5083_s17  }
  0x25   :  { %s5084_s20 = smov [#allocation2]   ;;  %s5085_s22 = smov [#allocation7]  }
  0x26   :  { %s20_s21 = sshll.u32 %s5084_s20, 4  ;;  %s41_s23 = sshll.u32 %s5085_s22, 4  ;;  %s21_s21 = int_to_ptr.vmem [resolvable:$true] %s20_s21  ;;  %s5147_s23 = int_to_ptr.vmem [resolvable:$true] %s41_s23 }
  0x27   :  { %s4982_s26 = scalar_lea.hbm %s5265_s0, 256 }
  0x28   :  { %p4983_p2 = scmp.ne.s32.totalorder %s5265_s0, %s4982_s26  ;;  %p4986_p3 = scmp.lt.u32.totalorder %s4982_s26, %s5265_s0 }
  0x2a   :  { %p4988_p4 = pnand %p4986_p3, %p4983_p2 }
  0x2c   :  { %4991 = shalt.err (!%p4988_p4)
}
  0x2d   :  { %s4992_s3 = scalar_lea.vmem %s21_s21, 256  ;;  %p4997_p6 = scmp.lt.s32.totalorder %s21_s21, %s21_s21 }
  0x2e   :  { %p4993_p5 = scmp.ne.s32.totalorder %s21_s21, %s4992_s3  ;;  %p4998_p7 = scmp.lt.s32.totalorder %s4992_s3, %s4992_s3 }
  0x30   :  { %p4999_p8 = por %p4998_p7, %p4997_p6 }
  0x32   :  { %p5000_p9 = pnand %p4999_p8, %p4993_p5 }
  0x34   :  { %5003 = shalt.err (!%p5000_p9)
}
  0x35   :  { %23 = dma.hbm_to_vmem [thread:$0]  %s5265_s0, 256, %s21_s21, [#allocation3]  }
  0x36   :  { %s5004_s10 = scalar_lea.hbm %s5267_s2, 1024 }
  0x37   :  { %p5005_p10 = scmp.ne.s32.totalorder %s5267_s2, %s5004_s10  ;;  %p5008_p11 = scmp.lt.u32.totalorder %s5004_s10, %s5267_s2 }
  0x39   :  { %p5010_p12 = pnand %p5008_p11, %p5005_p10 }
  0x3b   :  { %5013 = shalt.err (!%p5010_p12)
}
  0x3c   :  { %s5014_s15 = scalar_lea.vmem %s5147_s23, 1024  ;;  %p5019_p0 = scmp.lt.s32.totalorder %s5147_s23, %s5147_s23 }
  0x3d   :  { %p5015_p13 = scmp.ne.s32.totalorder %s5147_s23, %s5014_s15  ;;  %p5020_p1 = scmp.lt.s32.totalorder %s5014_s15, %s5014_s15 }
  0x3f   :  { %p5021_p2 = por %p5020_p1, %p5019_p0 }
  0x41   :  { %p5022_p3 = pnand %p5021_p2, %p5015_p13 }
  0x43   :  { %5025 = shalt.err (!%p5022_p3)
}
  0x44   :  { %s5086_s0 = smov 64   ;;  %s5087_s16 = smov 4  }
  0x45   :  { %47 = dma.hbm_to_vmem [thread:$0]  %s5267_s2, 1024, %s5147_s23, [#allocation6], %s5086_s0, %s5086_s0, %s5087_s16  }
  0x46   :  { %s5088_s18 = smov [#allocation10]   ;;  %s5026_s22 = scalar_lea.hbm %s5269_s4, 48 }
  0x47   :  { %s66_s19 = sshll.u32 %s5088_s18, 4  ;;  %p5027_p4 = scmp.ne.s32.totalorder %s5269_s4, %s5026_s22  ;;  %s67_s19 = int_to_ptr.vmem [resolvable:$true] %s66_s19 }
  0x48   :  { %p5030_p5 = scmp.lt.u32.totalorder %s5026_s22, %s5269_s4 }
  0x4a   :  { %p5032_p6 = pnand %p5030_p5, %p5027_p4 }
  0x4c   :  { %5035 = shalt.err (!%p5032_p6)
}
  0x4d   :  { %s5036_s28 = scalar_lea.vmem %s67_s19, 48  ;;  %s5040_s2 = scalar_lea.vmem %s67_s19, 64 }
  0x4e   :  { %p5037_p7 = scmp.ne.s32.totalorder %s67_s19, %s5036_s28  ;;  %p5041_p8 = scmp.lt.s32.totalorder %s67_s19, %s67_s19 }
  0x4f   :  { %p5042_p9 = scmp.lt.s32.totalorder %s5040_s2, %s5036_s28 }
  0x51   :  { %p5043_p10 = por %p5042_p9, %p5041_p8 }
  0x53   :  { %p5044_p11 = pnand %p5043_p10, %p5037_p7 }
  0x55   :  { %5047 = shalt.err (!%p5044_p11)
}
  0x56   :  { %69 = dma.hbm_to_vmem [thread:$0]  %s5269_s4, 48, %s67_s19, [#allocation9]  }
  0x57   :  { %5070 = dma.done.wait [#allocation3], 256  }
  0x58   :  { %5071 = vsyncadd [#allocation3], 4294967040 }
  0x59   :  { %5072 = dma.done.wait [#allocation6], 58368  }
  0x5a   :  { %5073 = vsyncadd [#allocation6], 4294908928 }
  0x5b   :  { %5074 = dma.done.wait [#allocation9], 2096  }
  0x5c   :  { %5075 = vsyncadd [#allocation9], 4294965200  ;;  %v4230_v0 = vld [vmem:[#allocation5 + $0x4] ss:$56 sps:$4 sm:$0xff]   ;;  %v4234_v2 = vld [vmem:[#allocation5] ss:$56 sps:$4 sm:$0xff]  }
  0x5d   :  { %v4232_v1 = vld [vmem:[#allocation5 + $0xc] ss:$56 sps:$4 sm:$0xff]   ;;  %2790 = vmatprep.subr.bf16.mxu0 %v4230_v0  ;;  %v4235_v3 = vld [vmem:[#allocation5 + $0x8] ss:$56 sps:$4 sm:$0xff]   ;;  %v4238_v5 = vld [vmem:[#allocation5 + $0x7c] ss:$56 sps:$4 sm:$0xff]  }
  0x5e   :  { %2872 = vmatprep.subr.bf16.mxu1 %v4232_v1  ;;  %v4236_v4 = vld [vmem:[#allocation5 + $0x74] ss:$56 sps:$4 sm:$0xff]   ;;  %2791 = vmatpush1.bf16.msra.mxu0 %v4234_v2  ;;  %v4240_v6 = vld [vmem:[#allocation5 + $0x70] ss:$56 sps:$4 sm:$0xff]   ;;  %v4242_v8 = vld [vmem:[#allocation5 + $0xe4] ss:$56 sps:$4 sm:$0xff]  }
  0x5f   :  { %2873 = vmatpush1.bf16.msra.mxu1 %v4235_v3  ;;  %2792 = vmatprep.subr.bf16.mxu0 %v4236_v4  ;;  %v4241_v7 = vld [vmem:[#allocation5 + $0x78] ss:$56 sps:$4 sm:$0xff]   ;;  %v4244_v9 = vld [vmem:[#allocation5 + $0xec] ss:$56 sps:$4 sm:$0xff]   ;;  %v4247_v11 = vld [vmem:[#allocation5 + $0xe8] ss:$56 sps:$4 sm:$0xff]  }
  0x60   :  { %2874 = vmatprep.subr.bf16.mxu1 %v4238_v5  ;;  %v4246_v10 = vld [vmem:[#allocation5 + $0xe0] ss:$56 sps:$4 sm:$0xff]   ;;  %v4248_v12 = vld [vmem:[#allocation5 + $0x154] ss:$56 sps:$4 sm:$0xff]   ;;  %v4252_v14 = vld [vmem:[#allocation5 + $0x150] ss:$56 sps:$4 sm:$0xff]  }
  0x61   :  { %v4250_v13 = vld [vmem:[#allocation5 + $0x15c] ss:$56 sps:$4 sm:$0xff]   ;;  %v4253_v15 = vld [vmem:[#allocation5 + $0x158] ss:$56 sps:$4 sm:$0xff]   ;;  %v4256_v17 = vld [vmem:[#allocation5 + $0x1cc] ss:$56 sps:$4 sm:$0xff]  }
  0x62   :  { %2793 = vmatpush1.bf16.msra.mxu0 %v4240_v6  ;;  %v4254_v16 = vld [vmem:[#allocation5 + $0x1c4] ss:$56 sps:$4 sm:$0xff]   ;;  %v4258_v18 = vld [vmem:[#allocation5 + $0x1c0] ss:$56 sps:$4 sm:$0xff]   ;;  %v4260_v20 = vld [vmem:[#allocation5 + $0x234] ss:$56 sps:$4 sm:$0xff]  }
  0x63   :  { %2875 = vmatpush1.bf16.msra.mxu1 %v4241_v7  ;;  %2794 = vmatprep.subr.bf16.mxu0 %v4242_v8  ;;  %v4259_v19 = vld [vmem:[#allocation5 + $0x1c8] ss:$56 sps:$4 sm:$0xff]   ;;  %v4262_v21 = vld [vmem:[#allocation5 + $0x23c] ss:$56 sps:$4 sm:$0xff]   ;;  %v4265_v23 = vld [vmem:[#allocation5 + $0x238] ss:$56 sps:$4 sm:$0xff]  }
  0x64   :  { %2876 = vmatprep.subr.bf16.mxu1 %v4244_v9  ;;  %v4264_v22 = vld [vmem:[#allocation5 + $0x230] ss:$56 sps:$4 sm:$0xff]   ;;  %v4266_v24 = vld [vmem:[#allocation5 + $0x2a4] ss:$56 sps:$4 sm:$0xff]   ;;  %v4270_v26 = vld [vmem:[#allocation5 + $0x2a0] ss:$56 sps:$4 sm:$0xff]  }
  0x65   :  { %v4268_v25 = vld [vmem:[#allocation5 + $0x2ac] ss:$56 sps:$4 sm:$0xff]   ;;  %v4271_v27 = vld [vmem:[#allocation5 + $0x2a8] ss:$56 sps:$4 sm:$0xff]   ;;  %v4274_v29 = vld [vmem:[#allocation5 + $0x31c] ss:$56 sps:$4 sm:$0xff]  }
  0x66   :  { %2795 = vmatpush1.bf16.msra.mxu0 %v4246_v10  ;;  %v4272_v28 = vld [vmem:[#allocation5 + $0x314] ss:$56 sps:$4 sm:$0xff]   ;;  %v4276_v30 = vld [vmem:[#allocation5 + $0x310] ss:$56 sps:$4 sm:$0xff]   ;;  %v4278_v32 = vld [vmem:[#allocation5 + $0x384] ss:$56 sps:$4 sm:$0xff]  }
  0x67   :  { %2877 = vmatpush1.bf16.msra.mxu1 %v4247_v11  ;;  %2796 = vmatprep.subr.bf16.mxu0 %v4248_v12  ;;  %v4277_v31 = vld [vmem:[#allocation5 + $0x318] ss:$56 sps:$4 sm:$0xff]   ;;  %v4280_v33 = vld [vmem:[#allocation5 + $0x38c] ss:$56 sps:$4 sm:$0xff]   ;;  %v4283_v35 = vld [vmem:[#allocation5 + $0x388] ss:$56 sps:$4 sm:$0xff]  }
  0x68   :  { %2878 = vmatprep.subr.bf16.mxu1 %v4250_v13  ;;  %v4282_v34 = vld [vmem:[#allocation5 + $0x380] ss:$56 sps:$4 sm:$0xff]   ;;  %v4284_v36 = vld [vmem:[#allocation5 + $0x3f4] ss:$56 sps:$4 sm:$0xff]   ;;  %v4288_v38 = vld [vmem:[#allocation5 + $0x3f0] ss:$56 sps:$4 sm:$0xff]  }
  0x69   :  { %v4286_v37 = vld [vmem:[#allocation5 + $0x3fc] ss:$56 sps:$4 sm:$0xff]   ;;  %v4289_v39 = vld [vmem:[#allocation5 + $0x3f8] ss:$56 sps:$4 sm:$0xff]   ;;  %v4292_v41 = vld [vmem:[#allocation5 + $0x46c] ss:$56 sps:$4 sm:$0xff]  }
  0x6a   :  { %2797 = vmatpush1.bf16.msra.mxu0 %v4252_v14  ;;  %v4290_v40 = vld [vmem:[#allocation5 + $0x464] ss:$56 sps:$4 sm:$0xff]   ;;  %v4294_v42 = vld [vmem:[#allocation5 + $0x460] ss:$56 sps:$4 sm:$0xff]   ;;  %v4296_v44 = vld [vmem:[#allocation5 + $0x4d4] ss:$56 sps:$4 sm:$0xff]  }
  0x6b   :  { %2879 = vmatpush1.bf16.msra.mxu1 %v4253_v15  ;;  %2798 = vmatprep.subr.bf16.mxu0 %v4254_v16  ;;  %v4295_v43 = vld [vmem:[#allocation5 + $0x468] ss:$56 sps:$4 sm:$0xff]   ;;  %v4298_v45 = vld [vmem:[#allocation5 + $0x4dc] ss:$56 sps:$4 sm:$0xff]   ;;  %v4301_v49 = vld [vmem:[#allocation5 + $0x4d8] ss:$56 sps:$4 sm:$0xff]  }
  0x6c   :  { %2880 = vmatprep.subr.bf16.mxu1 %v4256_v17  ;;  %v86_v46 = vld [vmem:[#allocation2] sm:$0xff]  ;;  %v4302_v50 = vld [vmem:[#allocation5 + $0x544] ss:$56 sps:$4 sm:$0xff]   ;;  %v4306_v52 = vld [vmem:[#allocation5 + $0x540] ss:$56 sps:$4 sm:$0xff]   ;;  %vm5090_vm0 = vmmov 0  }
  0x6d   :  { %v4300_v47 = vld [vmem:[#allocation5 + $0x4d0] ss:$56 sps:$4 sm:$0xff]   ;;  %v5190_v48 = vcombine.high %v86_v46, %v86_v46  ;;  %v4304_v51 = vld [vmem:[#allocation5 + $0x54c] ss:$56 sps:$4 sm:$0xff]   ;;  %v4310_v55 = vld [vmem:[#allocation5 + $0x5bc] ss:$56 sps:$4 sm:$0xff]   ;;  %v5194_v5 = vcombine.low %v86_v46, %v86_v46 }
  0x6e   :  { %2799 = vmatpush1.bf16.msra.mxu0 %v4258_v18  ;;  %v4307_v53 = vld [vmem:[#allocation5 + $0x548] ss:$56 sps:$4 sm:$0xff]   ;;  %v4308_v54 = vld [vmem:[#allocation5 + $0x5b4] ss:$56 sps:$4 sm:$0xff]   ;;  %v4313_v57 = vld [vmem:[#allocation5 + $0x5b8] ss:$56 sps:$4 sm:$0xff]  }
  0x6f   :  { %2881 = vmatpush1.bf16.msra.mxu1 %v4259_v19  ;;  %2800 = vmatprep.subr.bf16.mxu0 %v4260_v20  ;;  %v4312_v56 = vld [vmem:[#allocation5 + $0x5b0] ss:$56 sps:$4 sm:$0xff]   ;;  %v4314_v58 = vld [vmem:[#allocation5 + $0x624] ss:$56 sps:$4 sm:$0xff]   ;;  %v4318_v60 = vld [vmem:[#allocation5 + $0x620] ss:$56 sps:$4 sm:$0xff]  }
  0x70   :  { %2882 = vmatprep.subr.bf16.mxu1 %v4262_v21  ;;  %2822 = vmatprep.mubr.bf16.mxu0 %v5190_v48  ;;  %v4316_v59 = vld [vmem:[#allocation5 + $0x62c] ss:$56 sps:$4 sm:$0xff]   ;;  %v4319_v61 = vld [vmem:[#allocation5 + $0x628] ss:$56 sps:$4 sm:$0xff]   ;;  %v4322_v63 = vld [vmem:[#allocation5 + $0x69c] ss:$56 sps:$4 sm:$0xff]  }
  0x71   :  { %2904 = vmatprep.mubr.bf16.mxu1 %v5190_v48  ;;  %v4320_v62 = vld [vmem:[#allocation5 + $0x694] ss:$56 sps:$4 sm:$0xff]   ;;  %v4324_v0 = vld [vmem:[#allocation5 + $0x690] ss:$56 sps:$4 sm:$0xff]   ;;  %v4329_v2 = vld [vmem:[#allocation5 + $0x704] ss:$56 sps:$4 sm:$0xff]  }
  0x72   :  { %2801 = vmatpush1.bf16.msra.mxu0 %v4264_v22  ;;  %v4325_v1 = vld [vmem:[#allocation5 + $0x698] ss:$56 sps:$4 sm:$0xff]   ;;  %v4332_v3 = vld [vmem:[#allocation5 + $0x70c] ss:$56 sps:$4 sm:$0xff]   ;;  %v4330_v6 = vld [vmem:[#allocation5 + $0x708] ss:$56 sps:$4 sm:$0xff]  }
  0x73   :  { %2883 = vmatpush1.bf16.msra.mxu1 %v4265_v23  ;;  %2802 = vmatprep.subr.bf16.mxu0 %v4266_v24  ;;  %v4327_v4 = vld [vmem:[#allocation5 + $0x700] ss:$56 sps:$4 sm:$0xff]   ;;  %v4336_v7 = vld [vmem:[#allocation5 + $0x774] ss:$56 sps:$4 sm:$0xff]   ;;  %v4334_v9 = vld [vmem:[#allocation5 + $0x770] ss:$56 sps:$4 sm:$0xff]  }
  0x74   :  { %2884 = vmatprep.subr.bf16.mxu1 %v4268_v25  ;;  %v4339_v8 = vld [vmem:[#allocation5 + $0x77c] ss:$56 sps:$4 sm:$0xff]   ;;  %v4337_v10 = vld [vmem:[#allocation5 + $0x778] ss:$56 sps:$4 sm:$0xff]   ;;  %v4345_v12 = vld [vmem:[#allocation5 + $0x7ec] ss:$56 sps:$4 sm:$0xff]  }
  0x75   :  { %v4342_v11 = vld [vmem:[#allocation5 + $0x7e4] ss:$56 sps:$4 sm:$0xff]   ;;  %v4340_v13 = vld [vmem:[#allocation5 + $0x7e0] ss:$56 sps:$4 sm:$0xff]   ;;  %v4348_v15 = vld [vmem:[#allocation5 + $0x854] ss:$56 sps:$4 sm:$0xff]  }
  0x76   :  { %2803 = vmatpush1.bf16.msra.mxu0 %v4270_v26  ;;  %v4343_v14 = vld [vmem:[#allocation5 + $0x7e8] ss:$56 sps:$4 sm:$0xff]   ;;  %v4351_v16 = vld [vmem:[#allocation5 + $0x85c] ss:$56 sps:$4 sm:$0xff]   ;;  %v4349_v18 = vld [vmem:[#allocation5 + $0x858] ss:$56 sps:$4 sm:$0xff]  }
  0x77   :  { %2885 = vmatpush1.bf16.msra.mxu1 %v4271_v27  ;;  %2804 = vmatprep.subr.bf16.mxu0 %v4272_v28  ;;  %v4346_v17 = vld [vmem:[#allocation5 + $0x850] ss:$56 sps:$4 sm:$0xff]   ;;  %v4354_v19 = vld [vmem:[#allocation5 + $0x8c4] ss:$56 sps:$4 sm:$0xff]   ;;  %v4352_v21 = vld [vmem:[#allocation5 + $0x8c0] ss:$56 sps:$4 sm:$0xff]  }
  0x78   :  { %2886 = vmatprep.subr.bf16.mxu1 %v4274_v29  ;;  %v4357_v20 = vld [vmem:[#allocation5 + $0x8cc] ss:$56 sps:$4 sm:$0xff]   ;;  %v4355_v22 = vld [vmem:[#allocation5 + $0x8c8] ss:$56 sps:$4 sm:$0xff]   ;;  %v4363_v24 = vld [vmem:[#allocation5 + $0x93c] ss:$56 sps:$4 sm:$0xff]  }
  0x79   :  { %v4360_v23 = vld [vmem:[#allocation5 + $0x934] ss:$56 sps:$4 sm:$0xff]   ;;  %v4358_v25 = vld [vmem:[#allocation5 + $0x930] ss:$56 sps:$4 sm:$0xff]   ;;  %v4366_v27 = vld [vmem:[#allocation5 + $0x9a4] ss:$56 sps:$4 sm:$0xff]  }
  0x7a   :  { %2805 = vmatpush1.bf16.msra.mxu0 %v4276_v30  ;;  %v4361_v26 = vld [vmem:[#allocation5 + $0x938] ss:$56 sps:$4 sm:$0xff]   ;;  %v4369_v28 = vld [vmem:[#allocation5 + $0x9ac] ss:$56 sps:$4 sm:$0xff]   ;;  %s5092_s4 = smov [#allocation11]  }
  0x7b   :  { %2887 = vmatpush1.bf16.msra.mxu1 %v4277_v31  ;;  %2806 = vmatprep.subr.bf16.mxu0 %v4278_v32  ;;  %v5198_v29 = vld [vmem:[#allocation2 + $0x8] sm:$0xff]  ;;  %v4367_v32 = vld [vmem:[#allocation5 + $0x9a8] ss:$56 sps:$4 sm:$0xff]   ;;  %v4393_v46 = vld [vmem:[#allocation5 + $0xb6c] ss:$56 sps:$4 sm:$0xff]   ;;  %s3668_s30 = sshll.u32 %s5092_s4, 4  ;;  %s3669_s30 = int_to_ptr.vmem [resolvable:$true] %s3668_s30 }
  0x7c   :  { %2888 = vmatprep.subr.bf16.mxu1 %v4280_v33  ;;  %v5202_v30 = vcombine.high %v5198_v29, %v5198_v29  ;;  %v4364_v31 = vld [vmem:[#allocation5 + $0x9a0] ss:$56 sps:$4 sm:$0xff]   ;;  %v4372_v33 = vld [vmem:[#allocation5 + $0xa14] ss:$56 sps:$4 sm:$0xff]   ;;  %s5048_s3 = scalar_lea.vmem %s3669_s30, 128  ;;  %p5053_p13 = scmp.lt.s32.totalorder %s3669_s30, %s3669_s30 }
  0x7d   :  { %p5049_p12 = scmp.ne.s32.totalorder %s3669_s30, %s5048_s3  ;;  %p5054_p0 = scmp.lt.s32.totalorder %s5048_s3, %s5048_s3 }
  0x7e   :  { %2807 = vmatpush1.bf16.msra.mxu0 %v4282_v34  ;;  %v4375_v34 = vld [vmem:[#allocation5 + $0xa1c] ss:$56 sps:$4 sm:$0xff]  }
  0x7f   :  { %2889 = vmatpush1.bf16.msra.mxu1 %v4283_v35  ;;  %2808 = vmatprep.subr.bf16.mxu0 %v4284_v36  ;;  %v4370_v35 = vld [vmem:[#allocation5 + $0xa10] ss:$56 sps:$4 sm:$0xff]   ;;  %p5055_p1 = por %p5054_p0, %p5053_p13 }
  0x80   :  { %2890 = vmatprep.subr.bf16.mxu1 %v4286_v37  ;;  %v4373_v36 = vld [vmem:[#allocation5 + $0xa18] ss:$56 sps:$4 sm:$0xff]   ;;  %v4378_v37 = vld [vmem:[#allocation5 + $0xa84] ss:$56 sps:$4 sm:$0xff]  }
  0x81   :  { %p5056_p2 = pnand %p5055_p1, %p5049_p12 }
  0x82   :  { %2809 = vmatpush1.bf16.msra.mxu0 %v4288_v38  ;;  %v4381_v38 = vld [vmem:[#allocation5 + $0xa8c] ss:$56 sps:$4 sm:$0xff]  }
  0x83   :  { %2891 = vmatpush1.bf16.msra.mxu1 %v4289_v39  ;;  %2810 = vmatprep.subr.bf16.mxu0 %v4290_v40  ;;  %v4376_v39 = vld [vmem:[#allocation5 + $0xa80] ss:$56 sps:$4 sm:$0xff]  }
  0x84   :  { %2892 = vmatprep.subr.bf16.mxu1 %v4292_v41  ;;  %v4379_v40 = vld [vmem:[#allocation5 + $0xa88] ss:$56 sps:$4 sm:$0xff]   ;;  %v4384_v41 = vld [vmem:[#allocation5 + $0xaf4] ss:$56 sps:$4 sm:$0xff]  }
  0x86   :  { %2811 = vmatpush1.bf16.msra.mxu0 %v4294_v42  ;;  %v4387_v42 = vld [vmem:[#allocation5 + $0xafc] ss:$56 sps:$4 sm:$0xff]  }
  0x87   :  { %2893 = vmatpush1.bf16.msra.mxu1 %v4295_v43  ;;  %2812 = vmatprep.subr.bf16.mxu0 %v4296_v44  ;;  %v4382_v43 = vld [vmem:[#allocation5 + $0xaf0] ss:$56 sps:$4 sm:$0xff]  }
  0x88   :  { %2894 = vmatprep.subr.bf16.mxu1 %v4298_v45  ;;  %v4385_v44 = vld [vmem:[#allocation5 + $0xaf8] ss:$56 sps:$4 sm:$0xff]   ;;  %v4390_v45 = vld [vmem:[#allocation5 + $0xb64] ss:$56 sps:$4 sm:$0xff]  }
  0x8a   :  { %2813 = vmatpush1.bf16.msra.mxu0 %v4300_v47  ;;  %v4388_v47 = vld [vmem:[#allocation5 + $0xb60] ss:$56 sps:$4 sm:$0xff]  }
  0x8b   :  { %2895 = vmatpush1.bf16.msra.mxu1 %v4301_v49  ;;  %2814 = vmatprep.subr.bf16.mxu0 %v4302_v50  ;;  %v4391_v49 = vld [vmem:[#allocation5 + $0xb68] ss:$56 sps:$4 sm:$0xff]   ;;  %v4396_v50 = vld [vmem:[#allocation5 + $0xbd4] ss:$56 sps:$4 sm:$0xff]  }
  0x8c   :  { %2896 = vmatprep.subr.bf16.mxu1 %v4304_v51  ;;  %v4399_v51 = vld [vmem:[#allocation5 + $0xbdc] ss:$56 sps:$4 sm:$0xff]  }
  0x8e   :  { %2815 = vmatpush1.bf16.msra.mxu0 %v4306_v52  ;;  %v4394_v52 = vld [vmem:[#allocation5 + $0xbd0] ss:$56 sps:$4 sm:$0xff]  }
  0x8f   :  { %2897 = vmatpush1.bf16.msra.mxu1 %v4307_v53  ;;  %2816 = vmatprep.subr.bf16.mxu0 %v4308_v54  ;;  %v4397_v53 = vld [vmem:[#allocation5 + $0xbd8] ss:$56 sps:$4 sm:$0xff]   ;;  %v4402_v54 = vld [vmem:[#allocation5 + $0xc44] ss:$56 sps:$4 sm:$0xff]  }
  0x90   :  { %2898 = vmatprep.subr.bf16.mxu1 %v4310_v55  ;;  %v4405_v55 = vld [vmem:[#allocation5 + $0xc4c] ss:$56 sps:$4 sm:$0xff]  }
  0x92   :  { %2817 = vmatpush1.bf16.msra.mxu0 %v4312_v56  ;;  %v4400_v56 = vld [vmem:[#allocation5 + $0xc40] ss:$56 sps:$4 sm:$0xff]  }
  0x93   :  { %2899 = vmatpush1.bf16.msra.mxu1 %v4313_v57  ;;  %2818 = vmatprep.subr.bf16.mxu0 %v4314_v58  ;;  %v4403_v57 = vld [vmem:[#allocation5 + $0xc48] ss:$56 sps:$4 sm:$0xff]   ;;  %v4408_v58 = vld [vmem:[#allocation5 + $0xcb4] ss:$56 sps:$4 sm:$0xff]  }
  0x94   :  { %2900 = vmatprep.subr.bf16.mxu1 %v4316_v59  ;;  %v4411_v59 = vld [vmem:[#allocation5 + $0xcbc] ss:$56 sps:$4 sm:$0xff]  }
  0x96   :  { %2819 = vmatpush1.bf16.msra.mxu0 %v4318_v60  ;;  %v4406_v60 = vld [vmem:[#allocation5 + $0xcb0] ss:$56 sps:$4 sm:$0xff]  }
  0x97   :  { %2901 = vmatpush1.bf16.msra.mxu1 %v4319_v61  ;;  %2820 = vmatprep.subr.bf16.mxu0 %v4320_v62  ;;  %v4409_v61 = vld [vmem:[#allocation5 + $0xcb8] ss:$56 sps:$4 sm:$0xff]   ;;  %v4414_v62 = vld [vmem:[#allocation5 + $0xd24] ss:$56 sps:$4 sm:$0xff]  }
  0x98   :  { %2902 = vmatprep.subr.bf16.mxu1 %v4322_v63  ;;  %v4417_v63 = vld [vmem:[#allocation5 + $0xd2c] ss:$56 sps:$4 sm:$0xff]  }
  0x9a   :  { %2821 = vmatpush1.bf16.msra.mxu0 %v4324_v0  ;;  %v4412_v0 = vld [vmem:[#allocation5 + $0xd20] ss:$56 sps:$4 sm:$0xff]  }
  0x9b   :  { %2903 = vmatpush1.bf16.msra.mxu1 %v4325_v1  ;;  %2831 = vmatprep.subr.bf16.mxu0 %v4329_v2  ;;  %v4415_v1 = vld [vmem:[#allocation5 + $0xd28] ss:$56 sps:$4 sm:$0xff]   ;;  %v4420_v2 = vld [vmem:[#allocation5 + $0xd94] ss:$56 sps:$4 sm:$0xff]  }
  0x9c   :  { %2913 = vmatprep.subr.bf16.mxu1 %v4332_v3  ;;  %v4423_v3 = vld [vmem:[#allocation5 + $0xd9c] ss:$56 sps:$4 sm:$0xff]  }
  0x9d   :  { %2823 = vmatmul.mubr.bf16.vlgmr.msra.gmra.mrb[0].mxu0 %v5194_v5 }
  0x9e   :  { %2905 = vmatmul.mubr.bf16.vlgmr.msra.gmra.mrb[0].mxu1 %v5194_v5  ;;  %2832 = vmatpush1.bf16.msra.mxu0 %v4327_v4  ;;  %v4418_v4 = vld [vmem:[#allocation5 + $0xd90] ss:$56 sps:$4 sm:$0xff]  }
  0x9f   :  { %2914 = vmatpush1.bf16.msra.mxu1 %v4330_v6  ;;  %2833 = vmatprep.subr.bf16.mxu0 %v4336_v7  ;;  %v4421_v6 = vld [vmem:[#allocation5 + $0xd98] ss:$56 sps:$4 sm:$0xff]   ;;  %v4428_v7 = vld [vmem:[#allocation5 + $0x14] ss:$56 sps:$4 sm:$0xff]  }
  0xa0   :  { %2915 = vmatprep.subr.bf16.mxu1 %v4339_v8  ;;  %2863 = vmatprep.mubr.bf16.mxu0 %v5202_v30  ;;  %v4431_v8 = vld [vmem:[#allocation5 + $0x1c] ss:$56 sps:$4 sm:$0xff]  }
  0xa1   :  { %2945 = vmatprep.mubr.bf16.mxu1 %v5202_v30 }
  0xa2   :  { %2834 = vmatpush1.bf16.msra.mxu0 %v4334_v9  ;;  %v5208_v9 = vcombine.low %v5198_v29, %v5198_v29  ;;  %v4461_v29 = vld [vmem:[#allocation5 + $0x24c] ss:$56 sps:$4 sm:$0xff]  }
  0xa3   :  { %2916 = vmatpush1.bf16.msra.mxu1 %v4337_v10  ;;  %2835 = vmatprep.subr.bf16.mxu0 %v4342_v11  ;;  %v4426_v10 = vld [vmem:[#allocation5 + $0x10] ss:$56 sps:$4 sm:$0xff]  }
  0xa4   :  { %2917 = vmatprep.subr.bf16.mxu1 %v4345_v12  ;;  %v4429_v11 = vld [vmem:[#allocation5 + $0x18] ss:$56 sps:$4 sm:$0xff]   ;;  %v4434_v12 = vld [vmem:[#allocation5 + $0x84] ss:$56 sps:$4 sm:$0xff]  }
  0xa6   :  { %2836 = vmatpush1.bf16.msra.mxu0 %v4340_v13  ;;  %v4437_v13 = vld [vmem:[#allocation5 + $0x8c] ss:$56 sps:$4 sm:$0xff]  }
  0xa7   :  { %2918 = vmatpush1.bf16.msra.mxu1 %v4343_v14  ;;  %2837 = vmatprep.subr.bf16.mxu0 %v4348_v15  ;;  %v4432_v14 = vld [vmem:[#allocation5 + $0x80] ss:$56 sps:$4 sm:$0xff]  }
  0xa8   :  { %2919 = vmatprep.subr.bf16.mxu1 %v4351_v16  ;;  %v4435_v15 = vld [vmem:[#allocation5 + $0x88] ss:$56 sps:$4 sm:$0xff]   ;;  %v4440_v16 = vld [vmem:[#allocation5 + $0xf4] ss:$56 sps:$4 sm:$0xff]  }
  0xaa   :  { %2838 = vmatpush1.bf16.msra.mxu0 %v4346_v17  ;;  %v4443_v17 = vld [vmem:[#allocation5 + $0xfc] ss:$56 sps:$4 sm:$0xff]  }
  0xab   :  { %2920 = vmatpush1.bf16.msra.mxu1 %v4349_v18  ;;  %2839 = vmatprep.subr.bf16.mxu0 %v4354_v19  ;;  %v4438_v18 = vld [vmem:[#allocation5 + $0xf0] ss:$56 sps:$4 sm:$0xff]  }
  0xac   :  { %2921 = vmatprep.subr.bf16.mxu1 %v4357_v20  ;;  %v4441_v19 = vld [vmem:[#allocation5 + $0xf8] ss:$56 sps:$4 sm:$0xff]   ;;  %v4446_v20 = vld [vmem:[#allocation5 + $0x164] ss:$56 sps:$4 sm:$0xff]  }
  0xae   :  { %2840 = vmatpush1.bf16.msra.mxu0 %v4352_v21  ;;  %v4449_v21 = vld [vmem:[#allocation5 + $0x16c] ss:$56 sps:$4 sm:$0xff]  }
  0xaf   :  { %2922 = vmatpush1.bf16.msra.mxu1 %v4355_v22  ;;  %2841 = vmatprep.subr.bf16.mxu0 %v4360_v23  ;;  %v4444_v22 = vld [vmem:[#allocation5 + $0x160] ss:$56 sps:$4 sm:$0xff]  }
  0xb0   :  { %2923 = vmatprep.subr.bf16.mxu1 %v4363_v24  ;;  %v4447_v23 = vld [vmem:[#allocation5 + $0x168] ss:$56 sps:$4 sm:$0xff]   ;;  %v4452_v24 = vld [vmem:[#allocation5 + $0x1d4] ss:$56 sps:$4 sm:$0xff]  }
  0xb2   :  { %2842 = vmatpush1.bf16.msra.mxu0 %v4358_v25  ;;  %v4455_v25 = vld [vmem:[#allocation5 + $0x1dc] ss:$56 sps:$4 sm:$0xff]  }
  0xb3   :  { %2924 = vmatpush1.bf16.msra.mxu1 %v4361_v26  ;;  %2843 = vmatprep.subr.bf16.mxu0 %v4366_v27  ;;  %v4450_v26 = vld [vmem:[#allocation5 + $0x1d0] ss:$56 sps:$4 sm:$0xff]  }
  0xb4   :  { %2925 = vmatprep.subr.bf16.mxu1 %v4369_v28  ;;  %v4453_v27 = vld [vmem:[#allocation5 + $0x1d8] ss:$56 sps:$4 sm:$0xff]   ;;  %v4458_v28 = vld [vmem:[#allocation5 + $0x244] ss:$56 sps:$4 sm:$0xff]  }
  0xb6   :  { %2844 = vmatpush1.bf16.msra.mxu0 %v4364_v31  ;;  %v4456_v31 = vld [vmem:[#allocation5 + $0x240] ss:$56 sps:$4 sm:$0xff]  }
  0xb7   :  { %2926 = vmatpush1.bf16.msra.mxu1 %v4367_v32  ;;  %2845 = vmatprep.subr.bf16.mxu0 %v4372_v33  ;;  %v4459_v32 = vld [vmem:[#allocation5 + $0x248] ss:$56 sps:$4 sm:$0xff]   ;;  %v4464_v33 = vld [vmem:[#allocation5 + $0x2b4] ss:$56 sps:$4 sm:$0xff]  }
  0xb8   :  { %2927 = vmatprep.subr.bf16.mxu1 %v4375_v34  ;;  %v4467_v34 = vld [vmem:[#allocation5 + $0x2bc] ss:$56 sps:$4 sm:$0xff]  }
  0xba   :  { %2846 = vmatpush1.bf16.msra.mxu0 %v4370_v35  ;;  %v4462_v35 = vld [vmem:[#allocation5 + $0x2b0] ss:$56 sps:$4 sm:$0xff]  }
  0xbb   :  { %2928 = vmatpush1.bf16.msra.mxu1 %v4373_v36  ;;  %2847 = vmatprep.subr.bf16.mxu0 %v4378_v37  ;;  %v4465_v36 = vld [vmem:[#allocation5 + $0x2b8] ss:$56 sps:$4 sm:$0xff]   ;;  %v4470_v37 = vld [vmem:[#allocation5 + $0x324] ss:$56 sps:$4 sm:$0xff]  }
  0xbc   :  { %2929 = vmatprep.subr.bf16.mxu1 %v4381_v38  ;;  %v4473_v38 = vld [vmem:[#allocation5 + $0x32c] ss:$56 sps:$4 sm:$0xff]  }
  0xbe   :  { %2848 = vmatpush1.bf16.msra.mxu0 %v4376_v39  ;;  %v4468_v39 = vld [vmem:[#allocation5 + $0x320] ss:$56 sps:$4 sm:$0xff]  }
  0xbf   :  { %2930 = vmatpush1.bf16.msra.mxu1 %v4379_v40  ;;  %2849 = vmatprep.subr.bf16.mxu0 %v4384_v41  ;;  %v4471_v40 = vld [vmem:[#allocation5 + $0x328] ss:$56 sps:$4 sm:$0xff]   ;;  %v4476_v41 = vld [vmem:[#allocation5 + $0x394] ss:$56 sps:$4 sm:$0xff]  }
  0xc0   :  { %2931 = vmatprep.subr.bf16.mxu1 %v4387_v42  ;;  %v4479_v42 = vld [vmem:[#allocation5 + $0x39c] ss:$56 sps:$4 sm:$0xff]  }
  0xc2   :  { %2850 = vmatpush1.bf16.msra.mxu0 %v4382_v43  ;;  %v4474_v43 = vld [vmem:[#allocation5 + $0x390] ss:$56 sps:$4 sm:$0xff]  }
  0xc3   :  { %2932 = vmatpush1.bf16.msra.mxu1 %v4385_v44  ;;  %2851 = vmatprep.subr.bf16.mxu0 %v4390_v45  ;;  %v4477_v44 = vld [vmem:[#allocation5 + $0x398] ss:$56 sps:$4 sm:$0xff]   ;;  %v4482_v45 = vld [vmem:[#allocation5 + $0x404] ss:$56 sps:$4 sm:$0xff]  }
  0xc4   :  { %2933 = vmatprep.subr.bf16.mxu1 %v4393_v46  ;;  %v4485_v46 = vld [vmem:[#allocation5 + $0x40c] ss:$56 sps:$4 sm:$0xff]  }
  0xc6   :  { %2852 = vmatpush1.bf16.msra.mxu0 %v4388_v47  ;;  %v4480_v47 = vld [vmem:[#allocation5 + $0x400] ss:$56 sps:$4 sm:$0xff]  }
  0xc7   :  { %2934 = vmatpush1.bf16.msra.mxu1 %v4391_v49  ;;  %2853 = vmatprep.subr.bf16.mxu0 %v4396_v50  ;;  %v4483_v49 = vld [vmem:[#allocation5 + $0x408] ss:$56 sps:$4 sm:$0xff]   ;;  %v4488_v50 = vld [vmem:[#allocation5 + $0x474] ss:$56 sps:$4 sm:$0xff]  }
  0xc8   :  { %2935 = vmatprep.subr.bf16.mxu1 %v4399_v51  ;;  %v4491_v51 = vld [vmem:[#allocation5 + $0x47c] ss:$56 sps:$4 sm:$0xff]  }
  0xca   :  { %2854 = vmatpush1.bf16.msra.mxu0 %v4394_v52  ;;  %v4486_v52 = vld [vmem:[#allocation5 + $0x470] ss:$56 sps:$4 sm:$0xff]  }
  0xcb   :  { %2936 = vmatpush1.bf16.msra.mxu1 %v4397_v53  ;;  %2855 = vmatprep.subr.bf16.mxu0 %v4402_v54  ;;  %v4489_v53 = vld [vmem:[#allocation5 + $0x478] ss:$56 sps:$4 sm:$0xff]   ;;  %v4494_v54 = vld [vmem:[#allocation5 + $0x4e4] ss:$56 sps:$4 sm:$0xff]  }
  0xcc   :  { %2937 = vmatprep.subr.bf16.mxu1 %v4405_v55  ;;  %v4497_v55 = vld [vmem:[#allocation5 + $0x4ec] ss:$56 sps:$4 sm:$0xff]  }
  0xce   :  { %2856 = vmatpush1.bf16.msra.mxu0 %v4400_v56  ;;  %v4492_v56 = vld [vmem:[#allocation5 + $0x4e0] ss:$56 sps:$4 sm:$0xff]  }
  0xcf   :  { %2938 = vmatpush1.bf16.msra.mxu1 %v4403_v57  ;;  %2857 = vmatprep.subr.bf16.mxu0 %v4408_v58  ;;  %v4495_v57 = vld [vmem:[#allocation5 + $0x4e8] ss:$56 sps:$4 sm:$0xff]   ;;  %v4500_v58 = vld [vmem:[#allocation5 + $0x554] ss:$56 sps:$4 sm:$0xff]  }
  0xd0   :  { %2939 = vmatprep.subr.bf16.mxu1 %v4411_v59  ;;  %v4503_v59 = vld [vmem:[#allocation5 + $0x55c] ss:$56 sps:$4 sm:$0xff]  }
  0xd2   :  { %2858 = vmatpush1.bf16.msra.mxu0 %v4406_v60  ;;  %v4498_v60 = vld [vmem:[#allocation5 + $0x550] ss:$56 sps:$4 sm:$0xff]  }
  0xd3   :  { %2940 = vmatpush1.bf16.msra.mxu1 %v4409_v61  ;;  %2859 = vmatprep.subr.bf16.mxu0 %v4414_v62  ;;  %v4501_v61 = vld [vmem:[#allocation5 + $0x558] ss:$56 sps:$4 sm:$0xff]   ;;  %v4506_v62 = vld [vmem:[#allocation5 + $0x5c4] ss:$56 sps:$4 sm:$0xff]  }
  0xd4   :  { %2941 = vmatprep.subr.bf16.mxu1 %v4417_v63  ;;  %v4509_v63 = vld [vmem:[#allocation5 + $0x5cc] ss:$56 sps:$4 sm:$0xff]  }
  0xd6   :  { %2860 = vmatpush1.bf16.msra.mxu0 %v4412_v0  ;;  %v4504_v0 = vld [vmem:[#allocation5 + $0x5c0] ss:$56 sps:$4 sm:$0xff]  }
  0xd7   :  { %2942 = vmatpush1.bf16.msra.mxu1 %v4415_v1  ;;  %2861 = vmatprep.subr.bf16.mxu0 %v4420_v2  ;;  %v4507_v1 = vld [vmem:[#allocation5 + $0x5c8] ss:$56 sps:$4 sm:$0xff]   ;;  %v4512_v2 = vld [vmem:[#allocation5 + $0x634] ss:$56 sps:$4 sm:$0xff]  }
  0xd8   :  { %2943 = vmatprep.subr.bf16.mxu1 %v4423_v3  ;;  %v4515_v3 = vld [vmem:[#allocation5 + $0x63c] ss:$56 sps:$4 sm:$0xff]  }
  0xda   :  { %2862 = vmatpush1.bf16.msra.mxu0 %v4418_v4  ;;  %v4510_v4 = vld [vmem:[#allocation5 + $0x630] ss:$56 sps:$4 sm:$0xff]  }
  0xdb   :  { %2944 = vmatpush1.bf16.msra.mxu1 %v4421_v6  ;;  %2954 = vmatprep.subr.bf16.mxu0 %v4428_v7  ;;  %v4513_v6 = vld [vmem:[#allocation5 + $0x638] ss:$56 sps:$4 sm:$0xff]   ;;  %v4518_v7 = vld [vmem:[#allocation5 + $0x6a4] ss:$56 sps:$4 sm:$0xff]  }
  0xdc   :  { %3036 = vmatprep.subr.bf16.mxu1 %v4431_v8  ;;  %v4521_v8 = vld [vmem:[#allocation5 + $0x6ac] ss:$56 sps:$4 sm:$0xff]  }
  0xdd   :  { %2864 = vmatmul.mubr.bf16.vlgmr.msra.gmra.mrb[0].mxu0 %v5208_v9 }
  0xde   :  { %2946 = vmatmul.mubr.bf16.vlgmr.msra.gmra.mrb[0].mxu1 %v5208_v9  ;;  %2955 = vmatpush1.bf16.msra.mxu0 %v4426_v10  ;;  %v4516_v10 = vld [vmem:[#allocation5 + $0x6a0] ss:$56 sps:$4 sm:$0xff]  }
  0xdf   :  { %3037 = vmatpush1.bf16.msra.mxu1 %v4429_v11  ;;  %2956 = vmatprep.subr.bf16.mxu0 %v4434_v12  ;;  %v4519_v11 = vld [vmem:[#allocation5 + $0x6a8] ss:$56 sps:$4 sm:$0xff]   ;;  %v4524_v12 = vld [vmem:[#allocation5 + $0x714] ss:$56 sps:$4 sm:$0xff]  }
  0xe0   :  { %3038 = vmatprep.subr.bf16.mxu1 %v4437_v13  ;;  %2986 = vmatprep.mubr.bf16.mxu0 %v5190_v48  ;;  %v4527_v13 = vld [vmem:[#allocation5 + $0x71c] ss:$56 sps:$4 sm:$0xff]  }
  0xe1   :  { %3068 = vmatprep.mubr.bf16.mxu1 %v5190_v48 }
  0xe2   :  { %2957 = vmatpush1.bf16.msra.mxu0 %v4432_v14  ;;  %v4522_v14 = vld [vmem:[#allocation5 + $0x710] ss:$56 sps:$4 sm:$0xff]  }
  0xe3   :  { %3039 = vmatpush1.bf16.msra.mxu1 %v4435_v15  ;;  %2958 = vmatprep.subr.bf16.mxu0 %v4440_v16  ;;  %v4525_v15 = vld [vmem:[#allocation5 + $0x718] ss:$56 sps:$4 sm:$0xff]   ;;  %v4530_v16 = vld [vmem:[#allocation5 + $0x784] ss:$56 sps:$4 sm:$0xff]  }
  0xe4   :  { %3040 = vmatprep.subr.bf16.mxu1 %v4443_v17  ;;  %v4533_v17 = vld [vmem:[#allocation5 + $0x78c] ss:$56 sps:$4 sm:$0xff]  }
  0xe6   :  { %2959 = vmatpush1.bf16.msra.mxu0 %v4438_v18  ;;  %v4528_v18 = vld [vmem:[#allocation5 + $0x780] ss:$56 sps:$4 sm:$0xff]  }
  0xe7   :  { %3041 = vmatpush1.bf16.msra.mxu1 %v4441_v19  ;;  %2960 = vmatprep.subr.bf16.mxu0 %v4446_v20  ;;  %v4531_v19 = vld [vmem:[#allocation5 + $0x788] ss:$56 sps:$4 sm:$0xff]   ;;  %v4536_v20 = vld [vmem:[#allocation5 + $0x7f4] ss:$56 sps:$4 sm:$0xff]  }
  0xe8   :  { %3042 = vmatprep.subr.bf16.mxu1 %v4449_v21  ;;  %v4539_v21 = vld [vmem:[#allocation5 + $0x7fc] ss:$56 sps:$4 sm:$0xff]  }
  0xea   :  { %2961 = vmatpush1.bf16.msra.mxu0 %v4444_v22  ;;  %v4534_v22 = vld [vmem:[#allocation5 + $0x7f0] ss:$56 sps:$4 sm:$0xff]  }
  0xeb   :  { %3043 = vmatpush1.bf16.msra.mxu1 %v4447_v23  ;;  %2962 = vmatprep.subr.bf16.mxu0 %v4452_v24  ;;  %v4537_v23 = vld [vmem:[#allocation5 + $0x7f8] ss:$56 sps:$4 sm:$0xff]   ;;  %v4542_v24 = vld [vmem:[#allocation5 + $0x864] ss:$56 sps:$4 sm:$0xff]  }
  0xec   :  { %3044 = vmatprep.subr.bf16.mxu1 %v4455_v25  ;;  %v4545_v25 = vld [vmem:[#allocation5 + $0x86c] ss:$56 sps:$4 sm:$0xff]  }
  0xee   :  { %2963 = vmatpush1.bf16.msra.mxu0 %v4450_v26  ;;  %v4540_v26 = vld [vmem:[#allocation5 + $0x860] ss:$56 sps:$4 sm:$0xff]  }
  0xef   :  { %3045 = vmatpush1.bf16.msra.mxu1 %v4453_v27  ;;  %2964 = vmatprep.subr.bf16.mxu0 %v4458_v28  ;;  %v4543_v27 = vld [vmem:[#allocation5 + $0x868] ss:$56 sps:$4 sm:$0xff]   ;;  %v4548_v28 = vld [vmem:[#allocation5 + $0x8d4] ss:$56 sps:$4 sm:$0xff]  }
  0xf0   :  { %3046 = vmatprep.subr.bf16.mxu1 %v4461_v29  ;;  %v4551_v29 = vld [vmem:[#allocation5 + $0x8dc] ss:$56 sps:$4 sm:$0xff]  }
  0xf2   :  { %2965 = vmatpush1.bf16.msra.mxu0 %v4456_v31  ;;  %v4546_v31 = vld [vmem:[#allocation5 + $0x8d0] ss:$56 sps:$4 sm:$0xff]  }
  0xf3   :  { %3047 = vmatpush1.bf16.msra.mxu1 %v4459_v32  ;;  %2966 = vmatprep.subr.bf16.mxu0 %v4464_v33  ;;  %v4549_v32 = vld [vmem:[#allocation5 + $0x8d8] ss:$56 sps:$4 sm:$0xff]   ;;  %v4554_v33 = vld [vmem:[#allocation5 + $0x944] ss:$56 sps:$4 sm:$0xff]  }
  0xf4   :  { %3048 = vmatprep.subr.bf16.mxu1 %v4467_v34  ;;  %v4557_v34 = vld [vmem:[#allocation5 + $0x94c] ss:$56 sps:$4 sm:$0xff]  }
  0xf6   :  { %2967 = vmatpush1.bf16.msra.mxu0 %v4462_v35  ;;  %v4552_v35 = vld [vmem:[#allocation5 + $0x940] ss:$56 sps:$4 sm:$0xff]  }
  0xf7   :  { %3049 = vmatpush1.bf16.msra.mxu1 %v4465_v36  ;;  %2968 = vmatprep.subr.bf16.mxu0 %v4470_v37  ;;  %v4555_v36 = vld [vmem:[#allocation5 + $0x948] ss:$56 sps:$4 sm:$0xff]   ;;  %v4560_v37 = vld [vmem:[#allocation5 + $0x9b4] ss:$56 sps:$4 sm:$0xff]  }
  0xf8   :  { %3050 = vmatprep.subr.bf16.mxu1 %v4473_v38  ;;  %v4563_v38 = vld [vmem:[#allocation5 + $0x9bc] ss:$56 sps:$4 sm:$0xff]  }
  0xfa   :  { %2969 = vmatpush1.bf16.msra.mxu0 %v4468_v39  ;;  %v4558_v39 = vld [vmem:[#allocation5 + $0x9b0] ss:$56 sps:$4 sm:$0xff]  }
  0xfb   :  { %3051 = vmatpush1.bf16.msra.mxu1 %v4471_v40  ;;  %2970 = vmatprep.subr.bf16.mxu0 %v4476_v41  ;;  %v4561_v40 = vld [vmem:[#allocation5 + $0x9b8] ss:$56 sps:$4 sm:$0xff]   ;;  %v4566_v41 = vld [vmem:[#allocation5 + $0xa24] ss:$56 sps:$4 sm:$0xff]  }
  0xfc   :  { %3052 = vmatprep.subr.bf16.mxu1 %v4479_v42  ;;  %v4569_v42 = vld [vmem:[#allocation5 + $0xa2c] ss:$56 sps:$4 sm:$0xff]  }
  0xfe   :  { %2971 = vmatpush1.bf16.msra.mxu0 %v4474_v43  ;;  %v4564_v43 = vld [vmem:[#allocation5 + $0xa20] ss:$56 sps:$4 sm:$0xff]  }
  0xff   :  { %3053 = vmatpush1.bf16.msra.mxu1 %v4477_v44  ;;  %2972 = vmatprep.subr.bf16.mxu0 %v4482_v45  ;;  %v4567_v44 = vld [vmem:[#allocation5 + $0xa28] ss:$56 sps:$4 sm:$0xff]   ;;  %v4572_v45 = vld [vmem:[#allocation5 + $0xa94] ss:$56 sps:$4 sm:$0xff]  }
 0x100   :  { %3054 = vmatprep.subr.bf16.mxu1 %v4485_v46  ;;  %v4575_v46 = vld [vmem:[#allocation5 + $0xa9c] ss:$56 sps:$4 sm:$0xff]  }
 0x102   :  { %2973 = vmatpush1.bf16.msra.mxu0 %v4480_v47  ;;  %v4570_v47 = vld [vmem:[#allocation5 + $0xa90] ss:$56 sps:$4 sm:$0xff]  }
 0x103   :  { %3055 = vmatpush1.bf16.msra.mxu1 %v4483_v49  ;;  %2974 = vmatprep.subr.bf16.mxu0 %v4488_v50  ;;  %v4573_v49 = vld [vmem:[#allocation5 + $0xa98] ss:$56 sps:$4 sm:$0xff]   ;;  %v4578_v50 = vld [vmem:[#allocation5 + $0xb04] ss:$56 sps:$4 sm:$0xff]  }
 0x104   :  { %3056 = vmatprep.subr.bf16.mxu1 %v4491_v51  ;;  %v4581_v51 = vld [vmem:[#allocation5 + $0xb0c] ss:$56 sps:$4 sm:$0xff]  }
 0x106   :  { %2975 = vmatpush1.bf16.msra.mxu0 %v4486_v52  ;;  %v4576_v52 = vld [vmem:[#allocation5 + $0xb00] ss:$56 sps:$4 sm:$0xff]  }
 0x107   :  { %3057 = vmatpush1.bf16.msra.mxu1 %v4489_v53  ;;  %2976 = vmatprep.subr.bf16.mxu0 %v4494_v54  ;;  %v4579_v53 = vld [vmem:[#allocation5 + $0xb08] ss:$56 sps:$4 sm:$0xff]   ;;  %v4584_v54 = vld [vmem:[#allocation5 + $0xb74] ss:$56 sps:$4 sm:$0xff]  }
 0x108   :  { %3058 = vmatprep.subr.bf16.mxu1 %v4497_v55  ;;  %v4587_v55 = vld [vmem:[#allocation5 + $0xb7c] ss:$56 sps:$4 sm:$0xff]  }
 0x10a   :  { %2977 = vmatpush1.bf16.msra.mxu0 %v4492_v56  ;;  %v4582_v56 = vld [vmem:[#allocation5 + $0xb70] ss:$56 sps:$4 sm:$0xff]  }
 0x10b   :  { %3059 = vmatpush1.bf16.msra.mxu1 %v4495_v57  ;;  %2978 = vmatprep.subr.bf16.mxu0 %v4500_v58  ;;  %v4585_v57 = vld [vmem:[#allocation5 + $0xb78] ss:$56 sps:$4 sm:$0xff]   ;;  %v4590_v58 = vld [vmem:[#allocation5 + $0xbe4] ss:$56 sps:$4 sm:$0xff]  }
 0x10c   :  { %3060 = vmatprep.subr.bf16.mxu1 %v4503_v59  ;;  %v4593_v59 = vld [vmem:[#allocation5 + $0xbec] ss:$56 sps:$4 sm:$0xff]  }
 0x10e   :  { %2979 = vmatpush1.bf16.msra.mxu0 %v4498_v60  ;;  %v4588_v60 = vld [vmem:[#allocation5 + $0xbe0] ss:$56 sps:$4 sm:$0xff]  }
 0x10f   :  { %3061 = vmatpush1.bf16.msra.mxu1 %v4501_v61  ;;  %2980 = vmatprep.subr.bf16.mxu0 %v4506_v62  ;;  %v4591_v61 = vld [vmem:[#allocation5 + $0xbe8] ss:$56 sps:$4 sm:$0xff]   ;;  %v4596_v62 = vld [vmem:[#allocation5 + $0xc54] ss:$56 sps:$4 sm:$0xff]  }
 0x110   :  { %3062 = vmatprep.subr.bf16.mxu1 %v4509_v63  ;;  %v4599_v63 = vld [vmem:[#allocation5 + $0xc5c] ss:$56 sps:$4 sm:$0xff]  }
 0x112   :  { %2981 = vmatpush1.bf16.msra.mxu0 %v4504_v0  ;;  %v4594_v0 = vld [vmem:[#allocation5 + $0xc50] ss:$56 sps:$4 sm:$0xff]  }
 0x113   :  { %3063 = vmatpush1.bf16.msra.mxu1 %v4507_v1  ;;  %2982 = vmatprep.subr.bf16.mxu0 %v4512_v2  ;;  %v4597_v1 = vld [vmem:[#allocation5 + $0xc58] ss:$56 sps:$4 sm:$0xff]   ;;  %v4602_v2 = vld [vmem:[#allocation5 + $0xcc4] ss:$56 sps:$4 sm:$0xff]  }
 0x114   :  { %3064 = vmatprep.subr.bf16.mxu1 %v4515_v3  ;;  %v4605_v3 = vld [vmem:[#allocation5 + $0xccc] ss:$56 sps:$4 sm:$0xff]  }
 0x116   :  { %2983 = vmatpush1.bf16.msra.mxu0 %v4510_v4  ;;  %v4600_v4 = vld [vmem:[#allocation5 + $0xcc0] ss:$56 sps:$4 sm:$0xff]  }
 0x117   :  { %3065 = vmatpush1.bf16.msra.mxu1 %v4513_v6  ;;  %2984 = vmatprep.subr.bf16.mxu0 %v4518_v7  ;;  %v4603_v6 = vld [vmem:[#allocation5 + $0xcc8] ss:$56 sps:$4 sm:$0xff]   ;;  %v4608_v7 = vld [vmem:[#allocation5 + $0xd34] ss:$56 sps:$4 sm:$0xff]  }
 0x118   :  { %3066 = vmatprep.subr.bf16.mxu1 %v4521_v8  ;;  %v4611_v8 = vld [vmem:[#allocation5 + $0xd3c] ss:$56 sps:$4 sm:$0xff]  }
 0x11a   :  { %2985 = vmatpush1.bf16.msra.mxu0 %v4516_v10  ;;  %v4606_v10 = vld [vmem:[#allocation5 + $0xd30] ss:$56 sps:$4 sm:$0xff]  }
 0x11b   :  { %3067 = vmatpush1.bf16.msra.mxu1 %v4519_v11  ;;  %2995 = vmatprep.subr.bf16.mxu0 %v4524_v12  ;;  %v4609_v11 = vld [vmem:[#allocation5 + $0xd38] ss:$56 sps:$4 sm:$0xff]   ;;  %v4614_v12 = vld [vmem:[#allocation5 + $0xda4] ss:$56 sps:$4 sm:$0xff]  }
 0x11c   :  { %3077 = vmatprep.subr.bf16.mxu1 %v4527_v13  ;;  %v4617_v13 = vld [vmem:[#allocation5 + $0xdac] ss:$56 sps:$4 sm:$0xff]  }
 0x11d   :  { %2987 = vmatmul.mubr.bf16.vlgmr.msra.gmra.mrb[4].mxu0 %v5194_v5 }
 0x11e   :  { %3069 = vmatmul.mubr.bf16.vlgmr.msra.gmra.mrb[4].mxu1 %v5194_v5  ;;  %2996 = vmatpush1.bf16.msra.mxu0 %v4522_v14  ;;  %v4612_v14 = vld [vmem:[#allocation5 + $0xda0] ss:$56 sps:$4 sm:$0xff]  }
 0x11f   :  { %3078 = vmatpush1.bf16.msra.mxu1 %v4525_v15  ;;  %2997 = vmatprep.subr.bf16.mxu0 %v4530_v16  ;;  %v4615_v15 = vld [vmem:[#allocation5 + $0xda8] ss:$56 sps:$4 sm:$0xff]   ;;  %v4620_v16 = vld [vmem:[#allocation5 + $0x24] ss:$56 sps:$4 sm:$0xff]  }
 0x120   :  { %3079 = vmatprep.subr.bf16.mxu1 %v4533_v17  ;;  %3027 = vmatprep.mubr.bf16.mxu0 %v5202_v30  ;;  %v4623_v17 = vld [vmem:[#allocation5 + $0x2c] ss:$56 sps:$4 sm:$0xff]  }
 0x121   :  { %3109 = vmatprep.mubr.bf16.mxu1 %v5202_v30 }
 0x122   :  { %2998 = vmatpush1.bf16.msra.mxu0 %v4528_v18  ;;  %v4618_v18 = vld [vmem:[#allocation5 + $0x20] ss:$56 sps:$4 sm:$0xff]  }
 0x123   :  { %3080 = vmatpush1.bf16.msra.mxu1 %v4531_v19  ;;  %2999 = vmatprep.subr.bf16.mxu0 %v4536_v20  ;;  %v4621_v19 = vld [vmem:[#allocation5 + $0x28] ss:$56 sps:$4 sm:$0xff]   ;;  %v4626_v20 = vld [vmem:[#allocation5 + $0x94] ss:$56 sps:$4 sm:$0xff]  }
 0x124   :  { %3081 = vmatprep.subr.bf16.mxu1 %v4539_v21  ;;  %v4629_v21 = vld [vmem:[#allocation5 + $0x9c] ss:$56 sps:$4 sm:$0xff]  }
 0x126   :  { %3000 = vmatpush1.bf16.msra.mxu0 %v4534_v22  ;;  %v4624_v22 = vld [vmem:[#allocation5 + $0x90] ss:$56 sps:$4 sm:$0xff]  }
 0x127   :  { %3082 = vmatpush1.bf16.msra.mxu1 %v4537_v23  ;;  %3001 = vmatprep.subr.bf16.mxu0 %v4542_v24  ;;  %v4627_v23 = vld [vmem:[#allocation5 + $0x98] ss:$56 sps:$4 sm:$0xff]   ;;  %v4632_v24 = vld [vmem:[#allocation5 + $0x104] ss:$56 sps:$4 sm:$0xff]  }
 0x128   :  { %3083 = vmatprep.subr.bf16.mxu1 %v4545_v25  ;;  %v4635_v25 = vld [vmem:[#allocation5 + $0x10c] ss:$56 sps:$4 sm:$0xff]  }
 0x12a   :  { %3002 = vmatpush1.bf16.msra.mxu0 %v4540_v26  ;;  %v4630_v26 = vld [vmem:[#allocation5 + $0x100] ss:$56 sps:$4 sm:$0xff]  }
 0x12b   :  { %3084 = vmatpush1.bf16.msra.mxu1 %v4543_v27  ;;  %3003 = vmatprep.subr.bf16.mxu0 %v4548_v28  ;;  %v4633_v27 = vld [vmem:[#allocation5 + $0x108] ss:$56 sps:$4 sm:$0xff]   ;;  %v4638_v28 = vld [vmem:[#allocation5 + $0x174] ss:$56 sps:$4 sm:$0xff]  }
 0x12c   :  { %3085 = vmatprep.subr.bf16.mxu1 %v4551_v29  ;;  %v4641_v29 = vld [vmem:[#allocation5 + $0x17c] ss:$56 sps:$4 sm:$0xff]  }
 0x12e   :  { %3004 = vmatpush1.bf16.msra.mxu0 %v4546_v31  ;;  %v4636_v31 = vld [vmem:[#allocation5 + $0x170] ss:$56 sps:$4 sm:$0xff]  }
 0x12f   :  { %3086 = vmatpush1.bf16.msra.mxu1 %v4549_v32  ;;  %3005 = vmatprep.subr.bf16.mxu0 %v4554_v33  ;;  %v4639_v32 = vld [vmem:[#allocation5 + $0x178] ss:$56 sps:$4 sm:$0xff]   ;;  %v4644_v33 = vld [vmem:[#allocation5 + $0x1e4] ss:$56 sps:$4 sm:$0xff]  }
 0x130   :  { %3087 = vmatprep.subr.bf16.mxu1 %v4557_v34  ;;  %v4647_v34 = vld [vmem:[#allocation5 + $0x1ec] ss:$56 sps:$4 sm:$0xff]  }
 0x132   :  { %3006 = vmatpush1.bf16.msra.mxu0 %v4552_v35  ;;  %v4642_v35 = vld [vmem:[#allocation5 + $0x1e0] ss:$56 sps:$4 sm:$0xff]  }
 0x133   :  { %3088 = vmatpush1.bf16.msra.mxu1 %v4555_v36  ;;  %3007 = vmatprep.subr.bf16.mxu0 %v4560_v37  ;;  %v4645_v36 = vld [vmem:[#allocation5 + $0x1e8] ss:$56 sps:$4 sm:$0xff]   ;;  %v4650_v37 = vld [vmem:[#allocation5 + $0x254] ss:$56 sps:$4 sm:$0xff]  }
 0x134   :  { %3089 = vmatprep.subr.bf16.mxu1 %v4563_v38  ;;  %v4653_v38 = vld [vmem:[#allocation5 + $0x25c] ss:$56 sps:$4 sm:$0xff]  }
 0x136   :  { %3008 = vmatpush1.bf16.msra.mxu0 %v4558_v39  ;;  %v4648_v39 = vld [vmem:[#allocation5 + $0x250] ss:$56 sps:$4 sm:$0xff]  }
 0x137   :  { %3090 = vmatpush1.bf16.msra.mxu1 %v4561_v40  ;;  %3009 = vmatprep.subr.bf16.mxu0 %v4566_v41  ;;  %v4651_v40 = vld [vmem:[#allocation5 + $0x258] ss:$56 sps:$4 sm:$0xff]   ;;  %v4656_v41 = vld [vmem:[#allocation5 + $0x2c4] ss:$56 sps:$4 sm:$0xff]  }
 0x138   :  { %3091 = vmatprep.subr.bf16.mxu1 %v4569_v42  ;;  %v4659_v42 = vld [vmem:[#allocation5 + $0x2cc] ss:$56 sps:$4 sm:$0xff]  }
 0x13a   :  { %3010 = vmatpush1.bf16.msra.mxu0 %v4564_v43  ;;  %v4654_v43 = vld [vmem:[#allocation5 + $0x2c0] ss:$56 sps:$4 sm:$0xff]  }
 0x13b   :  { %3092 = vmatpush1.bf16.msra.mxu1 %v4567_v44  ;;  %3011 = vmatprep.subr.bf16.mxu0 %v4572_v45  ;;  %v4657_v44 = vld [vmem:[#allocation5 + $0x2c8] ss:$56 sps:$4 sm:$0xff]   ;;  %v4662_v45 = vld [vmem:[#allocation5 + $0x334] ss:$56 sps:$4 sm:$0xff]  }
 0x13c   :  { %3093 = vmatprep.subr.bf16.mxu1 %v4575_v46  ;;  %v4665_v46 = vld [vmem:[#allocation5 + $0x33c] ss:$56 sps:$4 sm:$0xff]  }
 0x13e   :  { %3012 = vmatpush1.bf16.msra.mxu0 %v4570_v47  ;;  %v4660_v47 = vld [vmem:[#allocation5 + $0x330] ss:$56 sps:$4 sm:$0xff]  }
 0x13f   :  { %3094 = vmatpush1.bf16.msra.mxu1 %v4573_v49  ;;  %3013 = vmatprep.subr.bf16.mxu0 %v4578_v50  ;;  %v4663_v49 = vld [vmem:[#allocation5 + $0x338] ss:$56 sps:$4 sm:$0xff]   ;;  %v4668_v50 = vld [vmem:[#allocation5 + $0x3a4] ss:$56 sps:$4 sm:$0xff]  }
 0x140   :  { %3095 = vmatprep.subr.bf16.mxu1 %v4581_v51  ;;  %v4671_v51 = vld [vmem:[#allocation5 + $0x3ac] ss:$56 sps:$4 sm:$0xff]  }
 0x142   :  { %3014 = vmatpush1.bf16.msra.mxu0 %v4576_v52  ;;  %v4666_v52 = vld [vmem:[#allocation5 + $0x3a0] ss:$56 sps:$4 sm:$0xff]  }
 0x143   :  { %3096 = vmatpush1.bf16.msra.mxu1 %v4579_v53  ;;  %3015 = vmatprep.subr.bf16.mxu0 %v4584_v54  ;;  %v4669_v53 = vld [vmem:[#allocation5 + $0x3a8] ss:$56 sps:$4 sm:$0xff]   ;;  %v4674_v54 = vld [vmem:[#allocation5 + $0x414] ss:$56 sps:$4 sm:$0xff]  }
 0x144   :  { %3097 = vmatprep.subr.bf16.mxu1 %v4587_v55  ;;  %v4677_v55 = vld [vmem:[#allocation5 + $0x41c] ss:$56 sps:$4 sm:$0xff]  }
 0x146   :  { %3016 = vmatpush1.bf16.msra.mxu0 %v4582_v56  ;;  %v4672_v56 = vld [vmem:[#allocation5 + $0x410] ss:$56 sps:$4 sm:$0xff]  }
 0x147   :  { %3098 = vmatpush1.bf16.msra.mxu1 %v4585_v57  ;;  %3017 = vmatprep.subr.bf16.mxu0 %v4590_v58  ;;  %v4675_v57 = vld [vmem:[#allocation5 + $0x418] ss:$56 sps:$4 sm:$0xff]   ;;  %v4680_v58 = vld [vmem:[#allocation5 + $0x484] ss:$56 sps:$4 sm:$0xff]  }
 0x148   :  { %3099 = vmatprep.subr.bf16.mxu1 %v4593_v59  ;;  %v4683_v59 = vld [vmem:[#allocation5 + $0x48c] ss:$56 sps:$4 sm:$0xff]  }
 0x14a   :  { %3018 = vmatpush1.bf16.msra.mxu0 %v4588_v60  ;;  %v4678_v60 = vld [vmem:[#allocation5 + $0x480] ss:$56 sps:$4 sm:$0xff]  }
 0x14b   :  { %3100 = vmatpush1.bf16.msra.mxu1 %v4591_v61  ;;  %3019 = vmatprep.subr.bf16.mxu0 %v4596_v62  ;;  %v4681_v61 = vld [vmem:[#allocation5 + $0x488] ss:$56 sps:$4 sm:$0xff]   ;;  %v4686_v62 = vld [vmem:[#allocation5 + $0x4f4] ss:$56 sps:$4 sm:$0xff]  }
 0x14c   :  { %3101 = vmatprep.subr.bf16.mxu1 %v4599_v63  ;;  %v4689_v63 = vld [vmem:[#allocation5 + $0x4fc] ss:$56 sps:$4 sm:$0xff]  }
 0x14e   :  { %3020 = vmatpush1.bf16.msra.mxu0 %v4594_v0  ;;  %v4684_v0 = vld [vmem:[#allocation5 + $0x4f0] ss:$56 sps:$4 sm:$0xff]  }
 0x14f   :  { %3102 = vmatpush1.bf16.msra.mxu1 %v4597_v1  ;;  %3021 = vmatprep.subr.bf16.mxu0 %v4602_v2  ;;  %v4687_v1 = vld [vmem:[#allocation5 + $0x4f8] ss:$56 sps:$4 sm:$0xff]   ;;  %v4692_v2 = vld [vmem:[#allocation5 + $0x564] ss:$56 sps:$4 sm:$0xff]  }
 0x150   :  { %3103 = vmatprep.subr.bf16.mxu1 %v4605_v3  ;;  %v4695_v3 = vld [vmem:[#allocation5 + $0x56c] ss:$56 sps:$4 sm:$0xff]  }
 0x152   :  { %3022 = vmatpush1.bf16.msra.mxu0 %v4600_v4  ;;  %v4690_v4 = vld [vmem:[#allocation5 + $0x560] ss:$56 sps:$4 sm:$0xff]  }
 0x153   :  { %3104 = vmatpush1.bf16.msra.mxu1 %v4603_v6  ;;  %3023 = vmatprep.subr.bf16.mxu0 %v4608_v7  ;;  %v4693_v6 = vld [vmem:[#allocation5 + $0x568] ss:$56 sps:$4 sm:$0xff]   ;;  %v4698_v7 = vld [vmem:[#allocation5 + $0x5d4] ss:$56 sps:$4 sm:$0xff]  }
 0x154   :  { %3105 = vmatprep.subr.bf16.mxu1 %v4611_v8  ;;  %v4701_v8 = vld [vmem:[#allocation5 + $0x5dc] ss:$56 sps:$4 sm:$0xff]  }
 0x156   :  { %3024 = vmatpush1.bf16.msra.mxu0 %v4606_v10  ;;  %v4696_v10 = vld [vmem:[#allocation5 + $0x5d0] ss:$56 sps:$4 sm:$0xff]  }
 0x157   :  { %3106 = vmatpush1.bf16.msra.mxu1 %v4609_v11  ;;  %3025 = vmatprep.subr.bf16.mxu0 %v4614_v12  ;;  %v4699_v11 = vld [vmem:[#allocation5 + $0x5d8] ss:$56 sps:$4 sm:$0xff]   ;;  %v4704_v12 = vld [vmem:[#allocation5 + $0x644] ss:$56 sps:$4 sm:$0xff]  }
 0x158   :  { %3107 = vmatprep.subr.bf16.mxu1 %v4617_v13  ;;  %v4707_v13 = vld [vmem:[#allocation5 + $0x64c] ss:$56 sps:$4 sm:$0xff]  }
 0x15a   :  { %3026 = vmatpush1.bf16.msra.mxu0 %v4612_v14  ;;  %v4702_v14 = vld [vmem:[#allocation5 + $0x640] ss:$56 sps:$4 sm:$0xff]  }
 0x15b   :  { %3108 = vmatpush1.bf16.msra.mxu1 %v4615_v15  ;;  %3118 = vmatprep.subr.bf16.mxu0 %v4620_v16  ;;  %v4705_v15 = vld [vmem:[#allocation5 + $0x648] ss:$56 sps:$4 sm:$0xff]   ;;  %v4710_v16 = vld [vmem:[#allocation5 + $0x6b4] ss:$56 sps:$4 sm:$0xff]  }
 0x15c   :  { %3200 = vmatprep.subr.bf16.mxu1 %v4623_v17  ;;  %v4713_v17 = vld [vmem:[#allocation5 + $0x6bc] ss:$56 sps:$4 sm:$0xff]  }
 0x15d   :  { %3028 = vmatmul.mubr.bf16.vlgmr.msra.gmra.mrb[4].mxu0 %v5208_v9 }
 0x15e   :  { %3110 = vmatmul.mubr.bf16.vlgmr.msra.gmra.mrb[4].mxu1 %v5208_v9  ;;  %3119 = vmatpush1.bf16.msra.mxu0 %v4618_v18  ;;  %v4708_v18 = vld [vmem:[#allocation5 + $0x6b0] ss:$56 sps:$4 sm:$0xff]  }
 0x15f   :  { %3201 = vmatpush1.bf16.msra.mxu1 %v4621_v19  ;;  %3120 = vmatprep.subr.bf16.mxu0 %v4626_v20  ;;  %v4711_v19 = vld [vmem:[#allocation5 + $0x6b8] ss:$56 sps:$4 sm:$0xff]   ;;  %v4716_v20 = vld [vmem:[#allocation5 + $0x724] ss:$56 sps:$4 sm:$0xff]  }
 0x160   :  { %3202 = vmatprep.subr.bf16.mxu1 %v4629_v21  ;;  %3150 = vmatprep.mubr.bf16.mxu0 %v5190_v48  ;;  %v4719_v21 = vld [vmem:[#allocation5 + $0x72c] ss:$56 sps:$4 sm:$0xff]  }
 0x161   :  { %3232 = vmatprep.mubr.bf16.mxu1 %v5190_v48 }
 0x162   :  { %3121 = vmatpush1.bf16.msra.mxu0 %v4624_v22  ;;  %v4714_v22 = vld [vmem:[#allocation5 + $0x720] ss:$56 sps:$4 sm:$0xff]  }
 0x163   :  { %3203 = vmatpush1.bf16.msra.mxu1 %v4627_v23  ;;  %3122 = vmatprep.subr.bf16.mxu0 %v4632_v24  ;;  %v4717_v23 = vld [vmem:[#allocation5 + $0x728] ss:$56 sps:$4 sm:$0xff]   ;;  %v4722_v24 = vld [vmem:[#allocation5 + $0x794] ss:$56 sps:$4 sm:$0xff]  }
 0x164   :  { %3204 = vmatprep.subr.bf16.mxu1 %v4635_v25  ;;  %v4725_v25 = vld [vmem:[#allocation5 + $0x79c] ss:$56 sps:$4 sm:$0xff]  }
 0x166   :  { %3123 = vmatpush1.bf16.msra.mxu0 %v4630_v26  ;;  %v4720_v26 = vld [vmem:[#allocation5 + $0x790] ss:$56 sps:$4 sm:$0xff]  }
 0x167   :  { %3205 = vmatpush1.bf16.msra.mxu1 %v4633_v27  ;;  %3124 = vmatprep.subr.bf16.mxu0 %v4638_v28  ;;  %v4723_v27 = vld [vmem:[#allocation5 + $0x798] ss:$56 sps:$4 sm:$0xff]   ;;  %v4728_v28 = vld [vmem:[#allocation5 + $0x804] ss:$56 sps:$4 sm:$0xff]  }
 0x168   :  { %3206 = vmatprep.subr.bf16.mxu1 %v4641_v29  ;;  %v4731_v29 = vld [vmem:[#allocation5 + $0x80c] ss:$56 sps:$4 sm:$0xff]  }
 0x16a   :  { %3125 = vmatpush1.bf16.msra.mxu0 %v4636_v31  ;;  %v4726_v31 = vld [vmem:[#allocation5 + $0x800] ss:$56 sps:$4 sm:$0xff]  }
 0x16b   :  { %3207 = vmatpush1.bf16.msra.mxu1 %v4639_v32  ;;  %3126 = vmatprep.subr.bf16.mxu0 %v4644_v33  ;;  %v4729_v32 = vld [vmem:[#allocation5 + $0x808] ss:$56 sps:$4 sm:$0xff]   ;;  %v4734_v33 = vld [vmem:[#allocation5 + $0x874] ss:$56 sps:$4 sm:$0xff]  }
 0x16c   :  { %3208 = vmatprep.subr.bf16.mxu1 %v4647_v34  ;;  %v4737_v34 = vld [vmem:[#allocation5 + $0x87c] ss:$56 sps:$4 sm:$0xff]  }
 0x16e   :  { %3127 = vmatpush1.bf16.msra.mxu0 %v4642_v35  ;;  %v4732_v35 = vld [vmem:[#allocation5 + $0x870] ss:$56 sps:$4 sm:$0xff]  }
 0x16f   :  { %3209 = vmatpush1.bf16.msra.mxu1 %v4645_v36  ;;  %3128 = vmatprep.subr.bf16.mxu0 %v4650_v37  ;;  %v4735_v36 = vld [vmem:[#allocation5 + $0x878] ss:$56 sps:$4 sm:$0xff]   ;;  %v4740_v37 = vld [vmem:[#allocation5 + $0x8e4] ss:$56 sps:$4 sm:$0xff]  }
 0x170   :  { %3210 = vmatprep.subr.bf16.mxu1 %v4653_v38  ;;  %v4743_v38 = vld [vmem:[#allocation5 + $0x8ec] ss:$56 sps:$4 sm:$0xff]  }
 0x172   :  { %3129 = vmatpush1.bf16.msra.mxu0 %v4648_v39  ;;  %v4738_v39 = vld [vmem:[#allocation5 + $0x8e0] ss:$56 sps:$4 sm:$0xff]  }
 0x173   :  { %3211 = vmatpush1.bf16.msra.mxu1 %v4651_v40  ;;  %3130 = vmatprep.subr.bf16.mxu0 %v4656_v41  ;;  %v4741_v40 = vld [vmem:[#allocation5 + $0x8e8] ss:$56 sps:$4 sm:$0xff]   ;;  %v4746_v41 = vld [vmem:[#allocation5 + $0x954] ss:$56 sps:$4 sm:$0xff]  }
 0x174   :  { %3212 = vmatprep.subr.bf16.mxu1 %v4659_v42  ;;  %v4749_v42 = vld [vmem:[#allocation5 + $0x95c] ss:$56 sps:$4 sm:$0xff]  }
 0x176   :  { %3131 = vmatpush1.bf16.msra.mxu0 %v4654_v43  ;;  %v4744_v43 = vld [vmem:[#allocation5 + $0x950] ss:$56 sps:$4 sm:$0xff]  }
 0x177   :  { %3213 = vmatpush1.bf16.msra.mxu1 %v4657_v44  ;;  %3132 = vmatprep.subr.bf16.mxu0 %v4662_v45  ;;  %v4747_v44 = vld [vmem:[#allocation5 + $0x958] ss:$56 sps:$4 sm:$0xff]   ;;  %v4752_v45 = vld [vmem:[#allocation5 + $0x9c4] ss:$56 sps:$4 sm:$0xff]  }
 0x178   :  { %3214 = vmatprep.subr.bf16.mxu1 %v4665_v46  ;;  %v4755_v46 = vld [vmem:[#allocation5 + $0x9cc] ss:$56 sps:$4 sm:$0xff]  }
 0x17a   :  { %3133 = vmatpush1.bf16.msra.mxu0 %v4660_v47 }
 0x17b   :  { %3215 = vmatpush1.bf16.msra.mxu1 %v4663_v49  ;;  %3134 = vmatprep.subr.bf16.mxu0 %v4668_v50 }
 0x17c   :  { %3216 = vmatprep.subr.bf16.mxu1 %v4671_v51 }
 0x17e   :  { %3135 = vmatpush1.bf16.msra.mxu0 %v4666_v52 }
 0x17f   :  { %3217 = vmatpush1.bf16.msra.mxu1 %v4669_v53  ;;  %3136 = vmatprep.subr.bf16.mxu0 %v4674_v54  ;;  %v4750_v54 = vld [vmem:[#allocation5 + $0x9c0] ss:$56 sps:$4 sm:$0xff]  }
 0x180   :  { %3218 = vmatprep.subr.bf16.mxu1 %v4677_v55 }
 0x182   :  { %3137 = vmatpush1.bf16.msra.mxu0 %v4672_v56 }
 0x183   :  { %3219 = vmatpush1.bf16.msra.mxu1 %v4675_v57  ;;  %3138 = vmatprep.subr.bf16.mxu0 %v4680_v58  ;;  %v4753_v58 = vld [vmem:[#allocation5 + $0x9c8] ss:$56 sps:$4 sm:$0xff]  }
 0x184   :  { %3220 = vmatprep.subr.bf16.mxu1 %v4683_v59 }
 0x186   :  { %3139 = vmatpush1.bf16.msra.mxu0 %v4678_v60 }
 0x187   :  { %3221 = vmatpush1.bf16.msra.mxu1 %v4681_v61  ;;  %3140 = vmatprep.subr.bf16.mxu0 %v4686_v62  ;;  %v4758_v61 = vld [vmem:[#allocation5 + $0xa34] ss:$56 sps:$4 sm:$0xff]  }
 0x188   :  { %3222 = vmatprep.subr.bf16.mxu1 %v4689_v63  ;;  %v4761_v62 = vld [vmem:[#allocation5 + $0xa3c] ss:$56 sps:$4 sm:$0xff]  }
 0x18a   :  { %3141 = vmatpush1.bf16.msra.mxu0 %v4684_v0 }
 0x18b   :  { %3223 = vmatpush1.bf16.msra.mxu1 %v4687_v1  ;;  %3142 = vmatprep.subr.bf16.mxu0 %v4692_v2 }
 0x18c   :  { %3224 = vmatprep.subr.bf16.mxu1 %v4695_v3  ;;  %v4756_v3 = vld [vmem:[#allocation5 + $0xa30] ss:$56 sps:$4 sm:$0xff]  }
 0x18e   :  { %3143 = vmatpush1.bf16.msra.mxu0 %v4690_v4  ;;  %v4759_v4 = vld [vmem:[#allocation5 + $0xa38] ss:$56 sps:$4 sm:$0xff]  }
 0x18f   :  { %3225 = vmatpush1.bf16.msra.mxu1 %v4693_v6  ;;  %3144 = vmatprep.subr.bf16.mxu0 %v4698_v7  ;;  %v4764_v6 = vld [vmem:[#allocation5 + $0xaa4] ss:$56 sps:$4 sm:$0xff]  }
 0x190   :  { %3226 = vmatprep.subr.bf16.mxu1 %v4701_v8  ;;  %v4767_v7 = vld [vmem:[#allocation5 + $0xaac] ss:$56 sps:$4 sm:$0xff]   ;;  %v4762_v8 = vld [vmem:[#allocation5 + $0xaa0] ss:$56 sps:$4 sm:$0xff]  }
 0x192   :  { %3145 = vmatpush1.bf16.msra.mxu0 %v4696_v10  ;;  %v4765_v10 = vld [vmem:[#allocation5 + $0xaa8] ss:$56 sps:$4 sm:$0xff]  }
 0x193   :  { %3227 = vmatpush1.bf16.msra.mxu1 %v4699_v11  ;;  %3146 = vmatprep.subr.bf16.mxu0 %v4704_v12  ;;  %v4770_v11 = vld [vmem:[#allocation5 + $0xb14] ss:$56 sps:$4 sm:$0xff]  }
 0x194   :  { %3228 = vmatprep.subr.bf16.mxu1 %v4707_v13  ;;  %v4773_v12 = vld [vmem:[#allocation5 + $0xb1c] ss:$56 sps:$4 sm:$0xff]   ;;  %v4768_v13 = vld [vmem:[#allocation5 + $0xb10] ss:$56 sps:$4 sm:$0xff]  }
 0x196   :  { %3147 = vmatpush1.bf16.msra.mxu0 %v4702_v14  ;;  %v4771_v14 = vld [vmem:[#allocation5 + $0xb18] ss:$56 sps:$4 sm:$0xff]  }
 0x197   :  { %3229 = vmatpush1.bf16.msra.mxu1 %v4705_v15  ;;  %3148 = vmatprep.subr.bf16.mxu0 %v4710_v16  ;;  %v4776_v15 = vld [vmem:[#allocation5 + $0xb84] ss:$56 sps:$4 sm:$0xff]  }
 0x198   :  { %3230 = vmatprep.subr.bf16.mxu1 %v4713_v17  ;;  %v4779_v16 = vld [vmem:[#allocation5 + $0xb8c] ss:$56 sps:$4 sm:$0xff]   ;;  %v4774_v17 = vld [vmem:[#allocation5 + $0xb80] ss:$56 sps:$4 sm:$0xff]  }
 0x19a   :  { %3149 = vmatpush1.bf16.msra.mxu0 %v4708_v18  ;;  %v4777_v18 = vld [vmem:[#allocation5 + $0xb88] ss:$56 sps:$4 sm:$0xff]  }
 0x19b   :  { %3231 = vmatpush1.bf16.msra.mxu1 %v4711_v19  ;;  %3159 = vmatprep.subr.bf16.mxu0 %v4716_v20  ;;  %v4782_v19 = vld [vmem:[#allocation5 + $0xbf4] ss:$56 sps:$4 sm:$0xff]  }
 0x19c   :  { %3241 = vmatprep.subr.bf16.mxu1 %v4719_v21  ;;  %v4785_v20 = vld [vmem:[#allocation5 + $0xbfc] ss:$56 sps:$4 sm:$0xff]   ;;  %v4780_v21 = vld [vmem:[#allocation5 + $0xbf0] ss:$56 sps:$4 sm:$0xff]  }
 0x19d   :  { %3151 = vmatmul.mubr.bf16.vlgmr.msra.gmra.mrb[8].mxu0 %v5194_v5 }
 0x19e   :  { %3233 = vmatmul.mubr.bf16.vlgmr.msra.gmra.mrb[8].mxu1 %v5194_v5  ;;  %3160 = vmatpush1.bf16.msra.mxu0 %v4714_v22  ;;  %v4783_v22 = vld [vmem:[#allocation5 + $0xbf8] ss:$56 sps:$4 sm:$0xff]  }
 0x19f   :  { %3242 = vmatpush1.bf16.msra.mxu1 %v4717_v23  ;;  %3161 = vmatprep.subr.bf16.mxu0 %v4722_v24  ;;  %v4788_v23 = vld [vmem:[#allocation5 + $0xc64] ss:$56 sps:$4 sm:$0xff]  }
 0x1a0   :  { %3243 = vmatprep.subr.bf16.mxu1 %v4725_v25  ;;  %3191 = vmatprep.mubr.bf16.mxu0 %v5202_v30  ;;  %v4791_v24 = vld [vmem:[#allocation5 + $0xc6c] ss:$56 sps:$4 sm:$0xff]   ;;  %v4786_v25 = vld [vmem:[#allocation5 + $0xc60] ss:$56 sps:$4 sm:$0xff]  }
 0x1a1   :  { %3273 = vmatprep.mubr.bf16.mxu1 %v5202_v30 }
 0x1a2   :  { %3162 = vmatpush1.bf16.msra.mxu0 %v4720_v26  ;;  %v4789_v26 = vld [vmem:[#allocation5 + $0xc68] ss:$56 sps:$4 sm:$0xff]  }
 0x1a3   :  { %3244 = vmatpush1.bf16.msra.mxu1 %v4723_v27  ;;  %3163 = vmatprep.subr.bf16.mxu0 %v4728_v28  ;;  %v4794_v27 = vld [vmem:[#allocation5 + $0xcd4] ss:$56 sps:$4 sm:$0xff]  }
 0x1a4   :  { %3245 = vmatprep.subr.bf16.mxu1 %v4731_v29  ;;  %v4797_v28 = vld [vmem:[#allocation5 + $0xcdc] ss:$56 sps:$4 sm:$0xff]   ;;  %v4792_v29 = vld [vmem:[#allocation5 + $0xcd0] ss:$56 sps:$4 sm:$0xff]  }
 0x1a6   :  { %3164 = vmatpush1.bf16.msra.mxu0 %v4726_v31  ;;  %v4795_v31 = vld [vmem:[#allocation5 + $0xcd8] ss:$56 sps:$4 sm:$0xff]  }
 0x1a7   :  { %3246 = vmatpush1.bf16.msra.mxu1 %v4729_v32  ;;  %3165 = vmatprep.subr.bf16.mxu0 %v4734_v33  ;;  %v4800_v32 = vld [vmem:[#allocation5 + $0xd44] ss:$56 sps:$4 sm:$0xff]  }
 0x1a8   :  { %3247 = vmatprep.subr.bf16.mxu1 %v4737_v34  ;;  %v4803_v33 = vld [vmem:[#allocation5 + $0xd4c] ss:$56 sps:$4 sm:$0xff]   ;;  %v4798_v34 = vld [vmem:[#allocation5 + $0xd40] ss:$56 sps:$4 sm:$0xff]  }
 0x1aa   :  { %3166 = vmatpush1.bf16.msra.mxu0 %v4732_v35  ;;  %v4801_v35 = vld [vmem:[#allocation5 + $0xd48] ss:$56 sps:$4 sm:$0xff]  }
 0x1ab   :  { %3248 = vmatpush1.bf16.msra.mxu1 %v4735_v36  ;;  %3167 = vmatprep.subr.bf16.mxu0 %v4740_v37  ;;  %v4806_v36 = vld [vmem:[#allocation5 + $0xdb4] ss:$56 sps:$4 sm:$0xff]  }
 0x1ac   :  { %3249 = vmatprep.subr.bf16.mxu1 %v4743_v38  ;;  %v4809_v37 = vld [vmem:[#allocation5 + $0xdbc] ss:$56 sps:$4 sm:$0xff]   ;;  %v4804_v38 = vld [vmem:[#allocation5 + $0xdb0] ss:$56 sps:$4 sm:$0xff]  }
 0x1ae   :  { %3168 = vmatpush1.bf16.msra.mxu0 %v4738_v39  ;;  %v4807_v39 = vld [vmem:[#allocation5 + $0xdb8] ss:$56 sps:$4 sm:$0xff]  }
 0x1af   :  { %3250 = vmatpush1.bf16.msra.mxu1 %v4741_v40  ;;  %3169 = vmatprep.subr.bf16.mxu0 %v4746_v41  ;;  %v4812_v40 = vld [vmem:[#allocation5 + $0x34] ss:$56 sps:$4 sm:$0xff]   ;;  %v4810_v41 = vld [vmem:[#allocation5 + $0x30] ss:$56 sps:$4 sm:$0xff]  }
 0x1b0   :  { %3251 = vmatprep.subr.bf16.mxu1 %v4749_v42  ;;  %v2865_v47 = vpop.f32.mrb[0].mxu0  ;;  %v4815_v42 = vld [vmem:[#allocation5 + $0xa4] ss:$56 sps:$4 sm:$0xff]  }
 0x1b1   :  { %v2947_v49 = vpop.f32.mrb[0].mxu1  ;;  %v3364_v50 = vmax.f32 %v2865_v47, 0.0  ;;  %v2867_v52 = vpop.f32.mrb[1].mxu0  ;;  %v4819_v47 = vld [vmem:[#allocation5 + $0x180] ss:$56 sps:$4 sm:$0xff]  }
 0x1b2   :  { %v3366_v51 = vmax.f32 %v2947_v49, 0.0  ;;  %v2949_v53 = vpop.f32.mrb[1].mxu1  ;;  %v3365_v55 = vmax.f32 %v2867_v52, 0.0  ;;  %v2869_v57 = vpop.f32.mrb[2].mxu0  ;;  %3170 = vmatpush1.bf16.msra.mxu0 %v4744_v43  ;;  %v4813_v43 = vld [vmem:[#allocation5 + $0xa0] ss:$56 sps:$4 sm:$0xff]  }
 0x1b3   :  { %v3367_v56 = vmax.f32 %v2949_v53, 0.0  ;;  %3252 = vmatpush1.bf16.msra.mxu1 %v4747_v44  ;;  %v2951_v59 = vpop.f32.mrb[2].mxu1  ;;  %v2870_v60 = vpop.f32.mrb[3].mxu0  ;;  %3171 = vmatprep.subr.bf16.mxu0 %v4752_v45  ;;  %v4818_v44 = vld [vmem:[#allocation5 + $0x114] ss:$56 sps:$4 sm:$0xff]  }
 0x1b4   :  { %3253 = vmatprep.subr.bf16.mxu1 %v4755_v46  ;;  %v2952_v63 = vpop.f32.mrb[3].mxu1  ;;  %v5226_v0 = vmax.f32 %v3364_v50, %v3365_v55  ;;  %v4816_v45 = vld [vmem:[#allocation5 + $0x110] ss:$56 sps:$4 sm:$0xff]   ;;  %v4821_v46 = vld [vmem:[#allocation5 + $0x184] ss:$56 sps:$4 sm:$0xff]  }
 0x1b5   :  { %v5228_v1 = vmax.f32 %v3366_v51, %v3367_v56  ;;  %v4824_v49 = vld [vmem:[#allocation5 + $0x1f4] ss:$56 sps:$4 sm:$0xff]   ;;  %v4822_v50 = vld [vmem:[#allocation5 + $0x1f0] ss:$56 sps:$4 sm:$0xff]   ;;  %v4827_v51 = vld [vmem:[#allocation5 + $0x264] ss:$56 sps:$4 sm:$0xff]  }
 0x1b6   :  { %3172 = vmatpush1.bf16.msra.mxu0 %v4750_v54  ;;  %v4825_v52 = vld [vmem:[#allocation5 + $0x260] ss:$56 sps:$4 sm:$0xff]   ;;  %v4830_v53 = vld [vmem:[#allocation5 + $0x2d4] ss:$56 sps:$4 sm:$0xff]   ;;  %v4833_v54 = vld [vmem:[#allocation5 + $0x344] ss:$56 sps:$4 sm:$0xff]  }
 0x1b7   :  { %v3385_v2 = vmax.f32 %v5226_v0, %v5228_v1  ;;  %3254 = vmatpush1.bf16.msra.mxu1 %v4753_v58  ;;  %3173 = vmatprep.subr.bf16.mxu0 %v4758_v61  ;;  %v4831_v55 = vld [vmem:[#allocation5 + $0x340] ss:$56 sps:$4 sm:$0xff]   ;;  %v4836_v56 = vld [vmem:[#allocation5 + $0x3b4] ss:$56 sps:$4 sm:$0xff]   ;;  %v4834_v57 = vld [vmem:[#allocation5 + $0x3b0] ss:$56 sps:$4 sm:$0xff]  }
 0x1b8   :  { %3255 = vmatprep.subr.bf16.mxu1 %v4761_v62  ;;  %v4839_v58 = vld [vmem:[#allocation5 + $0x424] ss:$56 sps:$4 sm:$0xff]   ;;  %v4837_v59 = vld [vmem:[#allocation5 + $0x420] ss:$56 sps:$4 sm:$0xff]   ;;  %v4842_v60 = vld [vmem:[#allocation5 + $0x494] ss:$56 sps:$4 sm:$0xff]  }
 0x1b9   :  { %v4840_v61 = vld [vmem:[#allocation5 + $0x490] ss:$56 sps:$4 sm:$0xff]   ;;  %v4845_v62 = vld [vmem:[#allocation5 + $0x504] ss:$56 sps:$4 sm:$0xff]   ;;  %v4843_v63 = vld [vmem:[#allocation5 + $0x500] ss:$56 sps:$4 sm:$0xff]  }
 0x1ba   :  { %3174 = vmatpush1.bf16.msra.mxu0 %v4756_v3  ;;  %v4848_v3 = vld [vmem:[#allocation5 + $0x574] ss:$56 sps:$4 sm:$0xff]   ;;  %v4909_v0 = vld [vmem:[#allocation7 + $0x18] sm:$0xff]   ;;  %v4888_v1 = vld [vmem:[#allocation5 + $0xb90] ss:$56 sps:$4 sm:$0xff]  }
 0x1bb   :  { %3256 = vmatpush1.bf16.msra.mxu1 %v4759_v4  ;;  %3175 = vmatprep.subr.bf16.mxu0 %v4764_v6  ;;  %v4846_v4 = vld [vmem:[#allocation5 + $0x570] ss:$56 sps:$4 sm:$0xff]   ;;  %v4851_v6 = vld [vmem:[#allocation5 + $0x5e4] ss:$56 sps:$4 sm:$0xff]  }
 0x1bc   :  { %3257 = vmatprep.subr.bf16.mxu1 %v4767_v7  ;;  %v4849_v7 = vld [vmem:[#allocation5 + $0x5e0] ss:$56 sps:$4 sm:$0xff]  }
 0x1be   :  { %3176 = vmatpush1.bf16.msra.mxu0 %v4762_v8  ;;  %v4854_v8 = vld [vmem:[#allocation5 + $0x654] ss:$56 sps:$4 sm:$0xff]  }
 0x1bf   :  { %3258 = vmatpush1.bf16.msra.mxu1 %v4765_v10  ;;  %3177 = vmatprep.subr.bf16.mxu0 %v4770_v11  ;;  %v4852_v10 = vld [vmem:[#allocation5 + $0x650] ss:$56 sps:$4 sm:$0xff]   ;;  %v4857_v11 = vld [vmem:[#allocation5 + $0x6c4] ss:$56 sps:$4 sm:$0xff]  }
 0x1c0   :  { %3259 = vmatprep.subr.bf16.mxu1 %v4773_v12  ;;  %v4855_v12 = vld [vmem:[#allocation5 + $0x6c0] ss:$56 sps:$4 sm:$0xff]  }
 0x1c2   :  { %3178 = vmatpush1.bf16.msra.mxu0 %v4768_v13  ;;  %v4860_v13 = vld [vmem:[#allocation5 + $0x734] ss:$56 sps:$4 sm:$0xff]  }
 0x1c3   :  { %3260 = vmatpush1.bf16.msra.mxu1 %v4771_v14  ;;  %3179 = vmatprep.subr.bf16.mxu0 %v4776_v15  ;;  %v4858_v14 = vld [vmem:[#allocation5 + $0x730] ss:$56 sps:$4 sm:$0xff]   ;;  %v4863_v15 = vld [vmem:[#allocation5 + $0x7a4] ss:$56 sps:$4 sm:$0xff]  }
 0x1c4   :  { %3261 = vmatprep.subr.bf16.mxu1 %v4779_v16  ;;  %v4861_v16 = vld [vmem:[#allocation5 + $0x7a0] ss:$56 sps:$4 sm:$0xff]  }
 0x1c6   :  { %3180 = vmatpush1.bf16.msra.mxu0 %v4774_v17  ;;  %v4866_v17 = vld [vmem:[#allocation5 + $0x814] ss:$56 sps:$4 sm:$0xff]  }
 0x1c7   :  { %3262 = vmatpush1.bf16.msra.mxu1 %v4777_v18  ;;  %3181 = vmatprep.subr.bf16.mxu0 %v4782_v19  ;;  %v4864_v18 = vld [vmem:[#allocation5 + $0x810] ss:$56 sps:$4 sm:$0xff]   ;;  %v4869_v19 = vld [vmem:[#allocation5 + $0x884] ss:$56 sps:$4 sm:$0xff]  }
 0x1c8   :  { %3263 = vmatprep.subr.bf16.mxu1 %v4785_v20  ;;  %v4867_v20 = vld [vmem:[#allocation5 + $0x880] ss:$56 sps:$4 sm:$0xff]  }
 0x1ca   :  { %3182 = vmatpush1.bf16.msra.mxu0 %v4780_v21  ;;  %v4872_v21 = vld [vmem:[#allocation5 + $0x8f4] ss:$56 sps:$4 sm:$0xff]  }
 0x1cb   :  { %3264 = vmatpush1.bf16.msra.mxu1 %v4783_v22  ;;  %3183 = vmatprep.subr.bf16.mxu0 %v4788_v23  ;;  %v4870_v22 = vld [vmem:[#allocation5 + $0x8f0] ss:$56 sps:$4 sm:$0xff]   ;;  %v4875_v23 = vld [vmem:[#allocation5 + $0x964] ss:$56 sps:$4 sm:$0xff]  }
 0x1cc   :  { %3265 = vmatprep.subr.bf16.mxu1 %v4791_v24  ;;  %v4878_v24 = vld [vmem:[#allocation5 + $0x9d4] ss:$56 sps:$4 sm:$0xff]  }
 0x1ce   :  { %3184 = vmatpush1.bf16.msra.mxu0 %v4786_v25 }
 0x1cf   :  { %3266 = vmatpush1.bf16.msra.mxu1 %v4789_v26  ;;  %3185 = vmatprep.subr.bf16.mxu0 %v4794_v27 }
 0x1d0   :  { %3267 = vmatprep.subr.bf16.mxu1 %v4797_v28 }
 0x1d2   :  { %3186 = vmatpush1.bf16.msra.mxu0 %v4792_v29 }
 0x1d3   :  { %3268 = vmatpush1.bf16.msra.mxu1 %v4795_v31  ;;  %3187 = vmatprep.subr.bf16.mxu0 %v4800_v32 }
 0x1d4   :  { %3269 = vmatprep.subr.bf16.mxu1 %v4803_v33 }
 0x1d6   :  { %3188 = vmatpush1.bf16.msra.mxu0 %v4798_v34  ;;  %v4876_v34 = vld [vmem:[#allocation5 + $0x9d0] ss:$56 sps:$4 sm:$0xff]  }
 0x1d7   :  { %3270 = vmatpush1.bf16.msra.mxu1 %v4801_v35  ;;  %3189 = vmatprep.subr.bf16.mxu0 %v4806_v36 }
 0x1d8   :  { %3271 = vmatprep.subr.bf16.mxu1 %v4809_v37  ;;  %v4881_v37 = vld [vmem:[#allocation5 + $0xa44] ss:$56 sps:$4 sm:$0xff]  }
 0x1da   :  { %3190 = vmatpush1.bf16.msra.mxu0 %v4804_v38 }
 0x1db   :  { %3272 = vmatpush1.bf16.msra.mxu1 %v4807_v39  ;;  %3282 = vmatprep.subr.bf16.mxu0 %v4812_v40 }
 0x1dd   :  { %3192 = vmatmul.mubr.bf16.vlgmr.msra.gmra.mrb[8].mxu0 %v5208_v9 }
 0x1de   :  { %3274 = vmatmul.mubr.bf16.vlgmr.msra.gmra.mrb[8].mxu1 %v5208_v9  ;;  %3283 = vmatpush1.bf16.msra.mxu0 %v4810_v41 }
 0x1df   :  { %3314 = vmatprep.mubr.bf16.mxu0 %v5190_v48  ;;  %3284 = vmatprep.subr.bf16.mxu0 %v4815_v42  ;;  %v4828_v48 = vld [vmem:[#allocation5 + $0x2d0] ss:$56 sps:$4 sm:$0xff]   ;;  %v4879_v42 = vld [vmem:[#allocation5 + $0xa40] ss:$56 sps:$4 sm:$0xff]  }
 0x1e2   :  { %3285 = vmatpush1.bf16.msra.mxu0 %v4813_v43  ;;  %v4906_v43 = vld [vmem:[#allocation7] sm:$0xff]  }
 0x1e3   :  { %3286 = vmatprep.subr.bf16.mxu0 %v4818_v44  ;;  %v4884_v44 = vld [vmem:[#allocation5 + $0xab4] ss:$56 sps:$4 sm:$0xff]  }
 0x1e6   :  { %3287 = vmatpush1.bf16.msra.mxu0 %v4816_v45  ;;  %v5089_v45 = vmov 0.0  }
 0x1e7   :  { %3288 = vmatprep.subr.bf16.mxu0 %v4821_v46  ;;  %4167 = vmatprep.subr.bf16.mxu1 %v5089_v45 }
 0x1e8   :  { %4168 = vmatpush3.bf16.msra.mxu1 %v4906_v43  ;;  %4183 = vmatprep.mubr.msk.bf16.mxu1 %vm5090_vm0, %v5089_v45  ;;  %v4932_v43 = vld [vmem:[#allocation8 + $0x60] ss:$8 sps:$4 sm:$0xff]  }
 0x1e9   :  { %4169 = vmatprep.subr.bf16.mxu1 %v5089_v45 }
 0x1ea   :  { %3289 = vmatpush1.bf16.msra.mxu0 %v4819_v47  ;;  %v4907_v47 = vld [vmem:[#allocation7 + $0x8] sm:$0xff]  }
 0x1eb   :  { %3290 = vmatprep.subr.bf16.mxu0 %v4824_v49  ;;  %v4882_v49 = vld [vmem:[#allocation5 + $0xab0] ss:$56 sps:$4 sm:$0xff]  }
 0x1ec   :  { %4170 = vmatpush3.bf16.msra.mxu1 %v4907_v47  ;;  %v4131_v47 = vld [vmem:[#allocation10] ss:$0 sm:$0xff] }
 0x1ed   :  { %4171 = vmatprep.subr.bf16.mxu1 %v5089_v45 }
 0x1ee   :  { %3291 = vmatpush1.bf16.msra.mxu0 %v4822_v50  ;;  %v4887_v50 = vld [vmem:[#allocation5 + $0xb24] ss:$56 sps:$4 sm:$0xff]  }
 0x1ef   :  { %3292 = vmatprep.subr.bf16.mxu0 %v4827_v51  ;;  %v4908_v51 = vld [vmem:[#allocation7 + $0x10] sm:$0xff]  }
 0x1f0   :  { %4172 = vmatpush3.bf16.msra.mxu1 %v4908_v51 }
 0x1f1   :  { %4173 = vmatprep.subr.bf16.mxu1 %v5089_v45 }
 0x1f2   :  { %3293 = vmatpush1.bf16.msra.mxu0 %v4825_v52  ;;  %v4885_v52 = vld [vmem:[#allocation5 + $0xb20] ss:$56 sps:$4 sm:$0xff]  }
 0x1f3   :  { %3294 = vmatprep.subr.bf16.mxu0 %v4830_v53  ;;  %v4890_v53 = vld [vmem:[#allocation5 + $0xb94] ss:$56 sps:$4 sm:$0xff]  }
 0x1f4   :  { %4174 = vmatpush3.bf16.msra.mxu1 %v4909_v0 }
 0x1f5   :  { %4175 = vmatprep.subr.bf16.mxu1 %v5089_v45 }
 0x1f6   :  { %3295 = vmatpush1.bf16.msra.mxu0 %v4828_v48  ;;  %v4910_v48 = vld [vmem:[#allocation7 + $0x20] sm:$0xff]  }
 0x1f7   :  { %3296 = vmatprep.subr.bf16.mxu0 %v4833_v54  ;;  %v4891_v54 = vld [vmem:[#allocation5 + $0xc00] ss:$56 sps:$4 sm:$0xff]  }
 0x1f8   :  { %4176 = vmatpush3.bf16.msra.mxu1 %v4910_v48 }
 0x1f9   :  { %4177 = vmatprep.subr.bf16.mxu1 %v5089_v45 }
 0x1fa   :  { %3297 = vmatpush1.bf16.msra.mxu0 %v4831_v55  ;;  %v4896_v55 = vld [vmem:[#allocation5 + $0xc74] ss:$56 sps:$4 sm:$0xff]  }
 0x1fb   :  { %3298 = vmatprep.subr.bf16.mxu0 %v4836_v56  ;;  %v4894_v56 = vld [vmem:[#allocation5 + $0xc70] ss:$56 sps:$4 sm:$0xff]  }
 0x1fe   :  { %3299 = vmatpush1.bf16.msra.mxu0 %v4834_v57  ;;  %v4899_v57 = vld [vmem:[#allocation5 + $0xce4] ss:$56 sps:$4 sm:$0xff]  }
 0x1ff   :  { %3300 = vmatprep.subr.bf16.mxu0 %v4839_v58  ;;  %v4897_v58 = vld [vmem:[#allocation5 + $0xce0] ss:$56 sps:$4 sm:$0xff]  }
 0x202   :  { %3301 = vmatpush1.bf16.msra.mxu0 %v4837_v59  ;;  %v4902_v59 = vld [vmem:[#allocation5 + $0xd54] ss:$56 sps:$4 sm:$0xff]  }
 0x203   :  { %3302 = vmatprep.subr.bf16.mxu0 %v4842_v60  ;;  %v4900_v60 = vld [vmem:[#allocation5 + $0xd50] ss:$56 sps:$4 sm:$0xff]  }
 0x206   :  { %3303 = vmatpush1.bf16.msra.mxu0 %v4840_v61  ;;  %v4905_v61 = vld [vmem:[#allocation5 + $0xdc4] ss:$56 sps:$4 sm:$0xff]  }
 0x207   :  { %3304 = vmatprep.subr.bf16.mxu0 %v4845_v62  ;;  %v4903_v62 = vld [vmem:[#allocation5 + $0xdc0] ss:$56 sps:$4 sm:$0xff]  }
 0x20a   :  { %3305 = vmatpush1.bf16.msra.mxu0 %v4843_v63  ;;  %v4911_v63 = vld [vmem:[#allocation7 + $0x28] sm:$0xff]  }
 0x20b   :  { %3306 = vmatprep.subr.bf16.mxu0 %v4848_v3  ;;  %4178 = vmatpush3.bf16.msra.mxu1 %v4911_v63 }
 0x20c   :  { %4179 = vmatprep.subr.bf16.mxu1 %v5089_v45 }
 0x20e   :  { %3307 = vmatpush1.bf16.msra.mxu0 %v4846_v4 }
 0x20f   :  { %3308 = vmatprep.subr.bf16.mxu0 %v4851_v6 }
 0x212   :  { %3309 = vmatpush1.bf16.msra.mxu0 %v4849_v7 }
 0x213   :  { %3310 = vmatprep.subr.bf16.mxu0 %v4854_v8 }
 0x216   :  { %3311 = vmatpush1.bf16.msra.mxu0 %v4852_v10 }
 0x217   :  { %3312 = vmatprep.subr.bf16.mxu0 %v4857_v11 }
 0x21a   :  { %3313 = vmatpush1.bf16.msra.mxu0 %v4855_v12 }
 0x21b   :  { %3323 = vmatprep.subr.bf16.mxu0 %v4860_v13 }
 0x21d   :  { %3315 = vmatmul.mubr.bf16.vlgmr.msra.gmra.mrb[12].mxu0 %v5194_v5  ;;  %v4873_v5 = vld [vmem:[#allocation5 + $0x960] ss:$56 sps:$4 sm:$0xff]  }
 0x21e   :  { %3324 = vmatpush1.bf16.msra.mxu0 %v4858_v14  ;;  %3355 = vmatprep.mubr.bf16.mxu0 %v5202_v30 }
 0x21f   :  { %3325 = vmatprep.subr.bf16.mxu0 %v4863_v15 }
 0x222   :  { %3326 = vmatpush1.bf16.msra.mxu0 %v4861_v16 }
 0x223   :  { %3327 = vmatprep.subr.bf16.mxu0 %v4866_v17  ;;  %v4912_v17 = vld [vmem:[#allocation7 + $0x30] sm:$0xff]  }
 0x224   :  { %4180 = vmatpush3.bf16.msra.mxu1 %v4912_v17 }
 0x225   :  { %4181 = vmatprep.subr.bf16.mxu1 %v5089_v45  ;;  %v4935_v45 = vld [vmem:[#allocation8 + $0x70] ss:$8 sps:$4 sm:$0xff]  }
 0x226   :  { %3328 = vmatpush1.bf16.msra.mxu0 %v4864_v18 }
 0x227   :  { %3329 = vmatprep.subr.bf16.mxu0 %v4869_v19 }
 0x22a   :  { %3330 = vmatpush1.bf16.msra.mxu0 %v4867_v20  ;;  %v4913_v20 = vld [vmem:[#allocation7 + $0x38] sm:$0xff]  }
 0x22b   :  { %3331 = vmatprep.subr.bf16.mxu0 %v4872_v21  ;;  %4182 = vmatpush3.bf16.msra.mxu1 %v4913_v20  ;;  %v4916_v21 = vld [vmem:[#allocation8 + $0x4] ss:$8 sps:$4 sm:$0xff]  }
 0x22c   :  { %3614 = vmatprep.subr.bf16.mxu1 %v4916_v21 }
 0x22e   :  { %3332 = vmatpush1.bf16.msra.mxu0 %v4870_v22 }
 0x22f   :  { %3333 = vmatprep.subr.bf16.mxu0 %v4875_v23 }
 0x230   :  { %v3029_v25 = vpop.f32.mrb[4].mxu0 }
 0x231   :  { %v3111_v30 = vpop.f32.mrb[4].mxu1  ;;  %v3368_v26 = vmax.f32 %v3029_v25, 0.0  ;;  %v3031_v28 = vpop.f32.mrb[5].mxu0 }
 0x232   :  { %v3370_v27 = vmax.f32 %v3111_v30, 0.0  ;;  %v3113_v29 = vpop.f32.mrb[5].mxu1  ;;  %v3369_v31 = vmax.f32 %v3031_v28, 0.0  ;;  %v3033_v33 = vpop.f32.mrb[6].mxu0  ;;  %3334 = vmatpush1.bf16.msra.mxu0 %v4873_v5 }
 0x233   :  { %v3371_v32 = vmax.f32 %v3113_v29, 0.0  ;;  %v3115_v35 = vpop.f32.mrb[6].mxu1  ;;  %v3034_v36 = vpop.f32.mrb[7].mxu0  ;;  %3335 = vmatprep.subr.bf16.mxu0 %v4878_v24  ;;  %v4914_v29 = vld [vmem:[#allocation8] ss:$8 sps:$4 sm:$0xff]  }
 0x234   :  { %v3116_v38 = vpop.f32.mrb[7].mxu1  ;;  %v3380_v39 = vmax.f32 %v3368_v26, %v3369_v31  ;;  %v4917_v33 = vld [vmem:[#allocation8 + $0x10] ss:$8 sps:$4 sm:$0xff]   ;;  %v4920_v35 = vld [vmem:[#allocation8 + $0x20] ss:$8 sps:$4 sm:$0xff]  }
 0x235   :  { %v3381_v40 = vmax.f32 %v3370_v27, %v3371_v32  ;;  %v4919_v32 = vld [vmem:[#allocation8 + $0x14] ss:$8 sps:$4 sm:$0xff]   ;;  %v4928_v38 = vld [vmem:[#allocation8 + $0x44] ss:$8 sps:$4 sm:$0xff]  }
 0x236   :  { %3336 = vmatpush1.bf16.msra.mxu0 %v4876_v34  ;;  %v4922_v34 = vld [vmem:[#allocation8 + $0x24] ss:$8 sps:$4 sm:$0xff]   ;;  %v4925_v36 = vld [vmem:[#allocation8 + $0x34] ss:$8 sps:$4 sm:$0xff]  }
 0x237   :  { %v3386_v41 = vmax.f32 %v3380_v39, %v3381_v40  ;;  %3337 = vmatprep.subr.bf16.mxu0 %v4881_v37  ;;  %v4923_v37 = vld [vmem:[#allocation8 + $0x30] ss:$8 sps:$4 sm:$0xff]   ;;  %v4926_v39 = vld [vmem:[#allocation8 + $0x40] ss:$8 sps:$4 sm:$0xff]   ;;  %v4931_v40 = vld [vmem:[#allocation8 + $0x54] ss:$8 sps:$4 sm:$0xff]  }
 0x239   :  { %v5241_v46 = vmax.f32 %v3385_v2, %v3386_v41  ;;  %v4893_v2 = vld [vmem:[#allocation5 + $0xc04] ss:$56 sps:$4 sm:$0xff]   ;;  %v4929_v41 = vld [vmem:[#allocation8 + $0x50] ss:$8 sps:$4 sm:$0xff]  }
 0x23a   :  { %3338 = vmatpush1.bf16.msra.mxu0 %v4879_v42  ;;  %v4934_v42 = vld [vmem:[#allocation8 + $0x64] ss:$8 sps:$4 sm:$0xff]  }
 0x23b   :  { %3339 = vmatprep.subr.bf16.mxu0 %v4884_v44  ;;  %v4937_v44 = vld [vmem:[#allocation8 + $0x74] ss:$8 sps:$4 sm:$0xff]  }
 0x23e   :  { %3340 = vmatpush1.bf16.msra.mxu0 %v4882_v49 }
 0x23f   :  { %3341 = vmatprep.subr.bf16.mxu0 %v4887_v50 }
 0x242   :  { %3342 = vmatpush1.bf16.msra.mxu0 %v4885_v52 }
 0x243   :  { %3343 = vmatprep.subr.bf16.mxu0 %v4890_v53 }
 0x246   :  { %3344 = vmatpush1.bf16.msra.mxu0 %v4888_v1 }
 0x247   :  { %3345 = vmatprep.subr.bf16.mxu0 %v4893_v2  ;;  %v3524_v2 = vlaneseq }
 0x249   :  { %v3525_v48 = vshrl.u32 %v3524_v2, 7 }
 0x24a   :  { %3346 = vmatpush1.bf16.msra.mxu0 %v4891_v54 }
 0x24b   :  { %3347 = vmatprep.subr.bf16.mxu0 %v4896_v55  ;;  %v3526_v54 = vsub.s32 0, %v3525_v48  ;;  %v3530_v55 = vsub.s32 1, %v3525_v48 }
 0x24e   :  { %3348 = vmatpush1.bf16.msra.mxu0 %v4894_v56  ;;  %v3522_v56 = vld [vmem:[#allocation10 + $0x1] sm:$0x3] }
 0x24f   :  { %3349 = vmatprep.subr.bf16.mxu0 %v4899_v57  ;;  %v3527_v57 = vrot.slane %v3522_v56, %v3526_v54 }
 0x252   :  { %3350 = vmatpush1.bf16.msra.mxu0 %v4897_v58  ;;  %v3531_v58 = vrot.slane %v3522_v56, %v3530_v55 }
 0x253   :  { %3351 = vmatprep.subr.bf16.mxu0 %v4902_v59 }
 0x256   :  { %3352 = vmatpush1.bf16.msra.mxu0 %v4900_v60 }
 0x257   :  { %3353 = vmatprep.subr.bf16.mxu0 %v4905_v61 }
 0x25a   :  { %3354 = vmatpush1.bf16.msra.mxu0 %v4903_v62 }
 0x25d   :  { %3356 = vmatmul.mubr.bf16.vlgmr.msra.gmra.mrb[12].mxu0 %v5208_v9 }
 0x2b0   :  { %v3193_v3 = vpop.f32.mrb[8].mxu0 }
 0x2b1   :  { %v3275_v4 = vpop.f32.mrb[8].mxu1  ;;  %v3372_v6 = vmax.f32 %v3193_v3, 0.0  ;;  %v3195_v8 = vpop.f32.mrb[9].mxu0 }
 0x2b2   :  { %v3374_v7 = vmax.f32 %v3275_v4, 0.0  ;;  %v3277_v10 = vpop.f32.mrb[9].mxu1  ;;  %v3373_v11 = vmax.f32 %v3195_v8, 0.0  ;;  %v3197_v13 = vpop.f32.mrb[10].mxu0 }
 0x2b3   :  { %v3375_v12 = vmax.f32 %v3277_v10, 0.0  ;;  %v3279_v14 = vpop.f32.mrb[10].mxu1  ;;  %v3198_v15 = vpop.f32.mrb[11].mxu0 }
 0x2b4   :  { %v3280_v16 = vpop.f32.mrb[11].mxu1  ;;  %v3382_v18 = vmax.f32 %v3372_v6, %v3373_v11 }
 0x2b5   :  { %v3383_v19 = vmax.f32 %v3374_v7, %v3375_v12 }
 0x2b7   :  { %v3387_v9 = vmax.f32 %v3382_v18, %v3383_v19 }
 0x330   :  { %v3357_v22 = vpop.f32.mrb[12].mxu0 }
 0x331   :  { %v3376_v23 = vmax.f32 %v3357_v22, 0.0  ;;  %v3359_v5 = vpop.f32.mrb[13].mxu0 }
 0x332   :  { %v3377_v24 = vmax.f32 %v3359_v5, 0.0  ;;  %v3361_v25 = vpop.f32.mrb[14].mxu0 }
 0x333   :  { %v3362_v30 = vpop.f32.mrb[15].mxu0 }
 0x334   :  { %v3384_v26 = vmax.f32 %v3376_v23, %v3377_v24 }
 0x336   :  { %v3389_v27 = vmax.f32 %v3387_v9, %v3384_v26 }
 0x338   :  { %v3390_v28 = vmax.f32 %v5241_v46, %v3389_v27  ;;  %v5091_v46 = vmov 0  }
 0x33a   :  { %v3391_v31 = vpack.c.bf16 %v3390_v28, %v3390_v28 }
 0x33c   :  { %4184 = vmatmul.mubr.bf16.vlgmr.msra.gmra.mrb[12].mxu1 %v3391_v31 }
 0x33d   :  { %3615 = vmatpush1.bf16.msra.mxu1 %v4914_v29  ;;  %3646 = vmatprep.mubr.bf16.mxu1 %v5091_v46 }
 0x33e   :  { %3616 = vmatprep.subr.bf16.mxu1 %v4919_v32 }
 0x341   :  { %3617 = vmatpush1.bf16.msra.mxu1 %v4917_v33 }
 0x342   :  { %3618 = vmatprep.subr.bf16.mxu1 %v4922_v34 }
 0x345   :  { %3619 = vmatpush1.bf16.msra.mxu1 %v4920_v35 }
 0x346   :  { %3620 = vmatprep.subr.bf16.mxu1 %v4925_v36 }
 0x349   :  { %3621 = vmatpush1.bf16.msra.mxu1 %v4923_v37 }
 0x34a   :  { %3622 = vmatprep.subr.bf16.mxu1 %v4928_v38 }
 0x34d   :  { %3623 = vmatpush1.bf16.msra.mxu1 %v4926_v39 }
 0x34e   :  { %3624 = vmatprep.subr.bf16.mxu1 %v4931_v40 }
 0x351   :  { %3625 = vmatpush1.bf16.msra.mxu1 %v4929_v41 }
 0x352   :  { %3626 = vmatprep.subr.bf16.mxu1 %v4934_v42 }
 0x355   :  { %3627 = vmatpush1.bf16.msra.mxu1 %v4932_v43 }
 0x356   :  { %3628 = vmatprep.subr.bf16.mxu1 %v4937_v44 }
 0x359   :  { %3629 = vmatpush1.bf16.msra.mxu1 %v4935_v45 }
 0x40f   :  { %v3497_v49 = vpop.f32.mrb[12].mxu1 }
 0x410   :  { %v3498_v50 = vadd.f32 %v4131_v47, %v3497_v49  ;;  %v4185_v51 = vpop.f32.mrb[13].mxu1 }
 0x411   :  { %v3500_v52 = vpop.f32.mrb[14].mxu1 }
 0x412   :  { %v4140_v53 = vclamps-f32 %v3498_v50, 3.0  ;;  %v4186_v0 = vpop.f32.mrb[15].mxu1 }
 0x414   :  { %v3505_v1 = vpack.c.bf16 %v4140_v53, %v4140_v53 }
 0x416   :  { %3647 = vmatmul.mubr.bf16.vlgmr.msra.gmra.mrb[16].mxu1 %v3505_v1 }
 0x4e9   :  { %v3648_v59 = vpop.f32.mrb[16].mxu1 }
 0x4ea   :  { %v3650_v60 = vpop.f32.mrb[17].mxu1  ;;  %v3649_v61 = vadd.f32 %v3648_v59, %v3527_v57 }
 0x4eb   :  { %v3651_v62 = vadd.f32 %v3650_v60, %v3531_v58  ;;  %v3652_v63 = vpop.f32.mrb[18].mxu1 }
 0x4ec   :  { %v3653_v3 = vpop.f32.mrb[19].mxu1  ;;  %v3655_v6 = vmax.f32 %v3649_v61, 0.0 }
 0x4ed   :  { %v4157_v4 = vclamps-f32 %v3651_v62, 3.0 }
 0x4ef   :  { %v3658_v7 = vsub.f32 %v4157_v4, %v4140_v53 }
 0x4f1   :  { %v3659_v8 = vmul.f32 %v3658_v7, %v3655_v6 }
 0x4f3   :  { %v3660_v10 = vadd.f32 %v4140_v53, %v3659_v8 }
 0x4f5   :  { %3661 = vst [vmem:[#allocation11] sm:$0xff] %v3660_v10 }
 0x4f6   :  { %5059 = shalt.err (!%p5056_p2)
}
 0x4f7   :  { %s5060_s8 = scalar_lea.hbm %s5270_s5, 128 }
 0x4f8   :  { %p5061_p3 = scmp.ne.s32.totalorder %s5270_s5, %s5060_s8  ;;  %p5064_p4 = scmp.lt.u32.totalorder %s5060_s8, %s5270_s5 }
 0x4fa   :  { %p5066_p5 = pnand %p5064_p4, %p5061_p3 }
 0x4fc   :  { %5069 = shalt.err (!%p5066_p5)
}
 0x4fd   :  { %3671 = dma.vmem_to_hbm [thread:$0]  %s3669_s30, 128, %s5270_s5, [#allocation4]  }
 0x4fe   :  { %5076 = dma.done.wait [#allocation4], 128  }
 0x4ff   :  { %5077 = vsyncadd [#allocation4], 4294967168 }
 0x500   :  { %3675 = vsyncpa [#allocation3], 1 }
 0x501   :  { %3676 = vsyncpa [#allocation6], 1 }
 0x502   :  { %3677 = vsyncpa [#allocation9], 1 }
 0x503   :  { %3678 = vsyncpa [#allocation4], 1 }

</bundles_post_ra>
